<compile_context>
chip_gen: v5e
topology: v5e:2x2
jax: 0.10.0
libtpu: 0.0.40
codegen_flags: <defaults>
</compile_context>

<pallas_src>
import functools

import jax
import jax.numpy as jnp
from jax.experimental import pallas as pl
from jax.experimental.pallas import tpu as pltpu


BP = 8  # padded batch rows == one sublane tile


# ------------------------------ Fused kernel ---------------------------------
def _fused_lstm_kernel(x_ref, wih1_ref, whh1_ref, b1_ref,
                       wih2_ref, whh2_ref, b2_ref,
                       wfc_ref, bfc_ref, y_ref, xp_ref, *, T, B, H):
    """x_ref: (B*T, D) batch-major-flattened input; y_ref: (B, 1)."""
    f32 = jnp.float32

    # ---------------- one-time prologue (off the recurrence chain) -----------
    whh1 = whh1_ref[...]                                            # (H, 4H)
    # Fused layer-2 weight: stack [wih2; whh2] once -> (2H, 4H).
    w2 = jnp.concatenate([wih2_ref[...], whh2_ref[...]], axis=0)
    b2 = b2_ref[...]                                                # (1, 4H)

    # Hoisted layer-1 input projection: ONE (B*T, D) @ (D, 4H) MXU matmul for
    # the whole sequence (batch-major, as delivered -- no wrapper transpose).
    xp_bm = (jnp.dot(x_ref[...], wih1_ref[...], preferred_element_type=f32)
             + b1_ref[...])                                         # (B*T, 4H)

    # Relayout to padded time-major in VMEM scratch so every per-step slab is
    # a single aligned (8, 128) tile: scratch row (t*BP + b) <- xp row (b*T + t).
    xp_ref[...] = jnp.zeros_like(xp_ref)
    for t in range(T):
        for b in range(B):
            xp_ref[pl.ds(t * BP + b, 1), :] = xp_bm[b * T + t:b * T + t + 1, :]

    def lstm_cell(gates, c_prev):
        # PyTorch gate order: i, f, g, o.  Static lane slices (4H == 128), f32.
        i_g = jax.nn.sigmoid(gates[:, 0 * H:1 * H])
        f_g = jax.nn.sigmoid(gates[:, 1 * H:2 * H])
        g_g = jnp.tanh(gates[:, 2 * H:3 * H])
        o_g = jax.nn.sigmoid(gates[:, 3 * H:4 * H])
        c_new = f_g * c_prev + i_g * g_g
        h_new = o_g * jnp.tanh(c_new)
        return h_new, c_new

    z = jnp.zeros((BP, H), f32)
    h1, c1, h2, c2 = z, z, z, z
    # Static unroll over time (T small & fixed): all indexing stays static and
    # the scheduler sees the whole recurrence chain.
    for t in range(T):
        xp_t = xp_ref[pl.ds(t * BP, BP), :]               # aligned (8,128) vld
        g1 = xp_t + jnp.dot(h1, whh1, preferred_element_type=f32)
        h1, c1 = lstm_cell(g1, c1)
        # Fused layer-2 gates: ONE (BP, 2H) @ (2H, 4H) matmul instead of two.
        h12 = jnp.concatenate([h1, h2], axis=1)           # (BP, 2H)
        g2 = jnp.dot(h12, w2, preferred_element_type=f32) + b2
        h2, c2 = lstm_cell(g2, c2)

    # FC head on VPU + lane reduction (no epilogue MXU push); the only HBM
    # writeback of the whole kernel is this (B, 1) result.
    y_full = jnp.sum(h2 * wfc_ref[...], axis=1, keepdims=True) + bfc_ref[...]
    y_ref[...] = y_full[:B, :]


# ------------------------------ Wrapper ---------------------------------------
@jax.jit
def lstm_flow_predictor(x, layer_params, w_fc, b_fc):
    """x: (B, T, D) batch_first, like the PyTorch module.  2-layer LSTM."""
    assert len(layer_params) == 2, "kernel is specialized to num_layers=2"
    (wih1, whh1, b1), (wih2, whh2, b2) = layer_params
    B, T, D = x.shape
    H = whh1.shape[0]
    assert 4 * H == 128, "gate lane-slices assume 4*H == 128 (one vreg width)"
    assert B <= BP

    # Free bitcast only (contiguous reshape): no transpose launch in the wrapper.
    x_bm = x.reshape(B * T, D)

    kernel = functools.partial(_fused_lstm_kernel, T=T, B=B, H=H)
    full = lambda i: (0, 0)
    return pl.pallas_call(
        kernel,
        out_shape=jax.ShapeDtypeStruct((B, 1), jnp.float32),
        grid=(1,),  # single grid step; everything stays VMEM-resident
        in_specs=[
            pl.BlockSpec((B * T, D), full),
            pl.BlockSpec((D, 4 * H), full),
            pl.BlockSpec((H, 4 * H), full),
            pl.BlockSpec((1, 4 * H), full),
            pl.BlockSpec((H, 4 * H), full),
            pl.BlockSpec((H, 4 * H), full),
            pl.BlockSpec((1, 4 * H), full),
            pl.BlockSpec((1, H), full),
            pl.BlockSpec((1, 1), full),
        ],
        out_specs=pl.BlockSpec((B, 1), full),
        scratch_shapes=[pltpu.VMEM((T * BP, 4 * H), jnp.float32)],
        compiler_params=pltpu.CompilerParams(
            dimension_semantics=("arbitrary",)),
    )(x_bm, wih1, whh1, b1, wih2, whh2, b2, w_fc, b_fc)


# ------------------------------- Pure-JAX reference ----------------------------
def reference_forward(x, layer_params, w_fc, b_fc):
    h_seq = jnp.transpose(x, (1, 0, 2))
    for (w_ih, w_hh, bias) in layer_params:
        H = w_hh.shape[0]
        B = h_seq.shape[1]

        def step(carry, x_t, w_ih=w_ih, w_hh=w_hh, bias=bias, H=H):
            h, c = carry
            gates = x_t @ w_ih + h @ w_hh + bias
            i_g = jax.nn.sigmoid(gates[:, 0 * H:1 * H])
            f_g = jax.nn.sigmoid(gates[:, 1 * H:2 * H])
            g_g = jnp.tanh(gates[:, 2 * H:3 * H])
            o_g = jax.nn.sigmoid(gates[:, 3 * H:4 * H])
            c = f_g * c + i_g * g_g
            h = o_g * jnp.tanh(c)
            return (h, c), h

        init = (jnp.zeros((B, H), jnp.float32), jnp.zeros((B, H), jnp.float32))
        _, h_seq = jax.lax.scan(step, init, h_seq)
    return h_seq[-1] @ w_fc.T + b_fc


# ----------------------------------- Params ------------------------------------
def init_params(key, input_dim, hidden_dim, num_layers):
    """Deterministic PyTorch-style init: U(-1/sqrt(H), 1/sqrt(H))."""
    bound = 1.0 / jnp.sqrt(hidden_dim)
    layer_params = []
    for layer in range(num_layers):
        in_dim = input_dim if layer == 0 else hidden_dim
        key, k1, k2, k3, k4 = jax.random.split(key, 5)
        w_ih = jax.random.uniform(k1, (4 * hidden_dim, in_dim), jnp.float32, -bound, bound)
        w_hh = jax.random.uniform(k2, (4 * hidden_dim, hidden_dim), jnp.float32, -bound, bound)
        b_ih = jax.random.uniform(k3, (4 * hidden_dim,), jnp.float32, -bound, bound)
        b_hh = jax.random.uniform(k4, (4 * hidden_dim,), jnp.float32, -bound, bound)
        # Kernel layout: (in_dim, 4H), (H, 4H), combined bias (1, 4H).
        layer_params.append(
            (w_ih.T, w_hh.T, (b_ih + b_hh).reshape(1, 4 * hidden_dim))
        )
    key, k5, k6 = jax.random.split(key, 3)
    w_fc = jax.random.uniform(k5, (1, hidden_dim), jnp.float32, -bound, bound)
    b_fc = jax.random.uniform(k6, (1,), jnp.float32, -bound, bound)
    return tuple(layer_params), w_fc, b_fc.reshape(1, 1)  # (1,H), (1,1)


# ------------------------------------ Main --------------------------------------
if __name__ == "__main__":
    BATCH, SEQ, INPUT_DIM, HIDDEN_DIM, NUM_LAYERS = 2, 8, 16, 32, 2

    key = jax.random.PRNGKey(0)
    key_p, key_x = jax.random.split(key)

    layer_params, w_fc, b_fc = init_params(key_p, INPUT_DIM, HIDDEN_DIM, NUM_LAYERS)
    x = jax.random.normal(key_x, (BATCH, SEQ, INPUT_DIM), jnp.float32)

    y = lstm_flow_predictor(x, layer_params, w_fc, b_fc)
    y = jax.block_until_ready(y)

    y_ref = reference_forward(x, layer_params, w_fc, b_fc)
    assert y.shape == (BATCH, 1)
    assert jnp.allclose(y, y_ref, atol=1e-4, rtol=1e-4), (y, y_ref)

    print("KERNEL_OK")
</pallas_src>

<mosaic_0001>
module attributes {stable_mosaic.version = 11 : i64} {
  func.func @_fused_lstm_kernel(%arg0: i32, %arg1: memref<16x16xf32, #tpu.memory_space<vmem>>, %arg2: memref<16x128xf32, #tpu.memory_space<vmem>>, %arg3: memref<32x128xf32, #tpu.memory_space<vmem>>, %arg4: memref<1x128xf32, #tpu.memory_space<vmem>>, %arg5: memref<32x128xf32, #tpu.memory_space<vmem>>, %arg6: memref<32x128xf32, #tpu.memory_space<vmem>>, %arg7: memref<1x128xf32, #tpu.memory_space<vmem>>, %arg8: memref<1x32xf32, #tpu.memory_space<vmem>>, %arg9: memref<1x1xf32, #tpu.memory_space<vmem>>, %arg10: memref<2x1xf32, #tpu.memory_space<vmem>>, %arg11: memref<64x128xf32, #tpu.memory_space<vmem>>) attributes {dimension_semantics = [#tpu.dimension_semantics<arbitrary>], iteration_bounds = array<i64: 1>, scalar_prefetch = 0 : i64, scratch_operands = 1 : i64, tpu.core_type = #tpu.core_type<tc>, window_params = [{pipeline_mode = #tpu.pipeline_mode<synchronous>, transform_indices = @transform_0, window_bounds = array<i64: 16, 16>}, {pipeline_mode = #tpu.pipeline_mode<synchronous>, transform_indices = @transform_1, window_bounds = array<i64: 16, 128>}, {pipeline_mode = #tpu.pipeline_mode<synchronous>, transform_indices = @transform_2, window_bounds = array<i64: 32, 128>}, {pipeline_mode = #tpu.pipeline_mode<synchronous>, transform_indices = @transform_3, window_bounds = array<i64: 1, 128>}, {pipeline_mode = #tpu.pipeline_mode<synchronous>, transform_indices = @transform_4, window_bounds = array<i64: 32, 128>}, {pipeline_mode = #tpu.pipeline_mode<synchronous>, transform_indices = @transform_5, window_bounds = array<i64: 32, 128>}, {pipeline_mode = #tpu.pipeline_mode<synchronous>, transform_indices = @transform_6, window_bounds = array<i64: 1, 128>}, {pipeline_mode = #tpu.pipeline_mode<synchronous>, transform_indices = @transform_7, window_bounds = array<i64: 1, 32>}, {pipeline_mode = #tpu.pipeline_mode<synchronous>, transform_indices = @transform_8, window_bounds = array<i64: 1, 1>}, {pipeline_mode = #tpu.pipeline_mode<synchronous>, transform_indices = @transform_9, window_bounds = array<i64: 2, 1>}]} {
    %c0 = arith.constant 0 : index
    %c0_0 = arith.constant 0 : index
    %0 = vector.load %arg3[%c0, %c0_0] : memref<32x128xf32, #tpu.memory_space<vmem>>, vector<32x128xf32>
    %c0_1 = arith.constant 0 : index
    %c0_2 = arith.constant 0 : index
    %1 = vector.load %arg5[%c0_1, %c0_2] : memref<32x128xf32, #tpu.memory_space<vmem>>, vector<32x128xf32>
    %c0_3 = arith.constant 0 : index
    %c0_4 = arith.constant 0 : index
    %2 = vector.load %arg6[%c0_3, %c0_4] : memref<32x128xf32, #tpu.memory_space<vmem>>, vector<32x128xf32>
    %3 = tpu.concatenate %1, %2 in 0 : vector<32x128xf32>, vector<32x128xf32> -> vector<64x128xf32>
    %c0_5 = arith.constant 0 : index
    %c0_6 = arith.constant 0 : index
    %4 = vector.load %arg7[%c0_5, %c0_6] : memref<1x128xf32, #tpu.memory_space<vmem>>, vector<1x128xf32>
    %c0_7 = arith.constant 0 : index
    %c0_8 = arith.constant 0 : index
    %5 = vector.load %arg1[%c0_7, %c0_8] : memref<16x16xf32, #tpu.memory_space<vmem>>, vector<16x16xf32>
    %c0_9 = arith.constant 0 : index
    %c0_10 = arith.constant 0 : index
    %6 = vector.load %arg2[%c0_9, %c0_10] : memref<16x128xf32, #tpu.memory_space<vmem>>, vector<16x128xf32>
    %cst = arith.constant dense<0.000000e+00> : vector<16x128xf32>
    %7 = tpu.matmul %5, %6, %cst {dimension_numbers = #tpu.dot_dimension_numbers<[1], [0], [0], [1], [0, 0, 1, 1], [], []>} : vector<16x16xf32>, vector<16x128xf32>, vector<16x128xf32> -> vector<16x128xf32>
    %c0_11 = arith.constant 0 : index
    %c0_12 = arith.constant 0 : index
    %8 = vector.load %arg4[%c0_11, %c0_12] : memref<1x128xf32, #tpu.memory_space<vmem>>, vector<1x128xf32>
    %9 = vector.broadcast %8 : vector<1x128xf32> to vector<16x128xf32>
    %10 = arith.addf %7, %9 : vector<16x128xf32>
    %cst_13 = arith.constant 0.000000e+00 : f32
    %11 = vector.broadcast %cst_13 : f32 to vector<64x128xf32>
    %c0_14 = arith.constant 0 : index
    %c0_15 = arith.constant 0 : index
    %12 = vector.load %arg11[%c0_14, %c0_15] : memref<64x128xf32, #tpu.memory_space<vmem>>, vector<64x128xf32>
    tpu.vector_store %arg11[%c0_14, %c0_15], %11 {strides = array<i32>} : memref<64x128xf32, #tpu.memory_space<vmem>>, vector<64x128xf32>,
    %13 = vector.extract_strided_slice %10 {offsets = [0, 0], sizes = [1, 128], strides = [1, 1]} : vector<16x128xf32> to vector<1x128xf32>
    %c0_16 = arith.constant 0 : index
    %c0_17 = arith.constant 0 : index
    %14 = vector.load %arg11[%c0_16, %c0_17] : memref<64x128xf32, #tpu.memory_space<vmem>>, vector<1x128xf32>
    tpu.vector_store %arg11[%c0_16, %c0_17], %13 {strides = array<i32>} : memref<64x128xf32, #tpu.memory_space<vmem>>, vector<1x128xf32>,
    %15 = vector.extract_strided_slice %10 {offsets = [8, 0], sizes = [1, 128], strides = [1, 1]} : vector<16x128xf32> to vector<1x128xf32>
    %c1 = arith.constant 1 : index
    %c0_18 = arith.constant 0 : index
    %16 = vector.load %arg11[%c1, %c0_18] : memref<64x128xf32, #tpu.memory_space<vmem>>, vector<1x128xf32>
    tpu.vector_store %arg11[%c1, %c0_18], %15 {strides = array<i32>} : memref<64x128xf32, #tpu.memory_space<vmem>>, vector<1x128xf32>,
    %17 = vector.extract_strided_slice %10 {offsets = [1, 0], sizes = [1, 128], strides = [1, 1]} : vector<16x128xf32> to vector<1x128xf32>
    %c8 = arith.constant 8 : index
    %c0_19 = arith.constant 0 : index
    %18 = vector.load %arg11[%c8, %c0_19] : memref<64x128xf32, #tpu.memory_space<vmem>>, vector<1x128xf32>
    tpu.vector_store %arg11[%c8, %c0_19], %17 {strides = array<i32>} : memref<64x128xf32, #tpu.memory_space<vmem>>, vector<1x128xf32>,
    %19 = vector.extract_strided_slice %10 {offsets = [9, 0], sizes = [1, 128], strides = [1, 1]} : vector<16x128xf32> to vector<1x128xf32>
    %c9 = arith.constant 9 : index
    %c0_20 = arith.constant 0 : index
    %20 = vector.load %arg11[%c9, %c0_20] : memref<64x128xf32, #tpu.memory_space<vmem>>, vector<1x128xf32>
    tpu.vector_store %arg11[%c9, %c0_20], %19 {strides = array<i32>} : memref<64x128xf32, #tpu.memory_space<vmem>>, vector<1x128xf32>,
    %21 = vector.extract_strided_slice %10 {offsets = [2, 0], sizes = [1, 128], strides = [1, 1]} : vector<16x128xf32> to vector<1x128xf32>
    %c16 = arith.constant 16 : index
    %c0_21 = arith.constant 0 : index
    %22 = vector.load %arg11[%c16, %c0_21] : memref<64x128xf32, #tpu.memory_space<vmem>>, vector<1x128xf32>
    tpu.vector_store %arg11[%c16, %c0_21], %21 {strides = array<i32>} : memref<64x128xf32, #tpu.memory_space<vmem>>, vector<1x128xf32>,
    %23 = vector.extract_strided_slice %10 {offsets = [10, 0], sizes = [1, 128], strides = [1, 1]} : vector<16x128xf32> to vector<1x128xf32>
    %c17 = arith.constant 17 : index
    %c0_22 = arith.constant 0 : index
    %24 = vector.load %arg11[%c17, %c0_22] : memref<64x128xf32, #tpu.memory_space<vmem>>, vector<1x128xf32>
    tpu.vector_store %arg11[%c17, %c0_22], %23 {strides = array<i32>} : memref<64x128xf32, #tpu.memory_space<vmem>>, vector<1x128xf32>,
    %25 = vector.extract_strided_slice %10 {offsets = [3, 0], sizes = [1, 128], strides = [1, 1]} : vector<16x128xf32> to vector<1x128xf32>
    %c24 = arith.constant 24 : index
    %c0_23 = arith.constant 0 : index
    %26 = vector.load %arg11[%c24, %c0_23] : memref<64x128xf32, #tpu.memory_space<vmem>>, vector<1x128xf32>
    tpu.vector_store %arg11[%c24, %c0_23], %25 {strides = array<i32>} : memref<64x128xf32, #tpu.memory_space<vmem>>, vector<1x128xf32>,
    %27 = vector.extract_strided_slice %10 {offsets = [11, 0], sizes = [1, 128], strides = [1, 1]} : vector<16x128xf32> to vector<1x128xf32>
    %c25 = arith.constant 25 : index
    %c0_24 = arith.constant 0 : index
    %28 = vector.load %arg11[%c25, %c0_24] : memref<64x128xf32, #tpu.memory_space<vmem>>, vector<1x128xf32>
    tpu.vector_store %arg11[%c25, %c0_24], %27 {strides = array<i32>} : memref<64x128xf32, #tpu.memory_space<vmem>>, vector<1x128xf32>,
    %29 = vector.extract_strided_slice %10 {offsets = [4, 0], sizes = [1, 128], strides = [1, 1]} : vector<16x128xf32> to vector<1x128xf32>
    %c32 = arith.constant 32 : index
    %c0_25 = arith.constant 0 : index
    %30 = vector.load %arg11[%c32, %c0_25] : memref<64x128xf32, #tpu.memory_space<vmem>>, vector<1x128xf32>
    tpu.vector_store %arg11[%c32, %c0_25], %29 {strides = array<i32>} : memref<64x128xf32, #tpu.memory_space<vmem>>, vector<1x128xf32>,
    %31 = vector.extract_strided_slice %10 {offsets = [12, 0], sizes = [1, 128], strides = [1, 1]} : vector<16x128xf32> to vector<1x128xf32>
    %c33 = arith.constant 33 : index
    %c0_26 = arith.constant 0 : index
    %32 = vector.load %arg11[%c33, %c0_26] : memref<64x128xf32, #tpu.memory_space<vmem>>, vector<1x128xf32>
    tpu.vector_store %arg11[%c33, %c0_26], %31 {strides = array<i32>} : memref<64x128xf32, #tpu.memory_space<vmem>>, vector<1x128xf32>,
    %33 = vector.extract_strided_slice %10 {offsets = [5, 0], sizes = [1, 128], strides = [1, 1]} : vector<16x128xf32> to vector<1x128xf32>
    %c40 = arith.constant 40 : index
    %c0_27 = arith.constant 0 : index
    %34 = vector.load %arg11[%c40, %c0_27] : memref<64x128xf32, #tpu.memory_space<vmem>>, vector<1x128xf32>
    tpu.vector_store %arg11[%c40, %c0_27], %33 {strides = array<i32>} : memref<64x128xf32, #tpu.memory_space<vmem>>, vector<1x128xf32>,
    %35 = vector.extract_strided_slice %10 {offsets = [13, 0], sizes = [1, 128], strides = [1, 1]} : vector<16x128xf32> to vector<1x128xf32>
    %c41 = arith.constant 41 : index
    %c0_28 = arith.constant 0 : index
    %36 = vector.load %arg11[%c41, %c0_28] : memref<64x128xf32, #tpu.memory_space<vmem>>, vector<1x128xf32>
    tpu.vector_store %arg11[%c41, %c0_28], %35 {strides = array<i32>} : memref<64x128xf32, #tpu.memory_space<vmem>>, vector<1x128xf32>,
    %37 = vector.extract_strided_slice %10 {offsets = [6, 0], sizes = [1, 128], strides = [1, 1]} : vector<16x128xf32> to vector<1x128xf32>
    %c48 = arith.constant 48 : index
    %c0_29 = arith.constant 0 : index
    %38 = vector.load %arg11[%c48, %c0_29] : memref<64x128xf32, #tpu.memory_space<vmem>>, vector<1x128xf32>
    tpu.vector_store %arg11[%c48, %c0_29], %37 {strides = array<i32>} : memref<64x128xf32, #tpu.memory_space<vmem>>, vector<1x128xf32>,
    %39 = vector.extract_strided_slice %10 {offsets = [14, 0], sizes = [1, 128], strides = [1, 1]} : vector<16x128xf32> to vector<1x128xf32>
    %c49 = arith.constant 49 : index
    %c0_30 = arith.constant 0 : index
    %40 = vector.load %arg11[%c49, %c0_30] : memref<64x128xf32, #tpu.memory_space<vmem>>, vector<1x128xf32>
    tpu.vector_store %arg11[%c49, %c0_30], %39 {strides = array<i32>} : memref<64x128xf32, #tpu.memory_space<vmem>>, vector<1x128xf32>,
    %41 = vector.extract_strided_slice %10 {offsets = [7, 0], sizes = [1, 128], strides = [1, 1]} : vector<16x128xf32> to vector<1x128xf32>
    %c56 = arith.constant 56 : index
    %c0_31 = arith.constant 0 : index
    %42 = vector.load %arg11[%c56, %c0_31] : memref<64x128xf32, #tpu.memory_space<vmem>>, vector<1x128xf32>
    tpu.vector_store %arg11[%c56, %c0_31], %41 {strides = array<i32>} : memref<64x128xf32, #tpu.memory_space<vmem>>, vector<1x128xf32>,
    %43 = vector.extract_strided_slice %10 {offsets = [15, 0], sizes = [1, 128], strides = [1, 1]} : vector<16x128xf32> to vector<1x128xf32>
    %c57 = arith.constant 57 : index
    %c0_32 = arith.constant 0 : index
    %44 = vector.load %arg11[%c57, %c0_32] : memref<64x128xf32, #tpu.memory_space<vmem>>, vector<1x128xf32>
    tpu.vector_store %arg11[%c57, %c0_32], %43 {strides = array<i32>} : memref<64x128xf32, #tpu.memory_space<vmem>>, vector<1x128xf32>,
    %cst_33 = arith.constant 0.000000e+00 : f32
    %45 = vector.broadcast %cst_33 : f32 to vector<8x32xf32>
    %c0_34 = arith.constant 0 : index
    %c0_35 = arith.constant 0 : index
    %46 = vector.load %arg11[%c0_34, %c0_35] : memref<64x128xf32, #tpu.memory_space<vmem>>, vector<8x128xf32>
    %cst_36 = arith.constant dense<0.000000e+00> : vector<8x128xf32>
    %47 = tpu.matmul %45, %0, %cst_36 {dimension_numbers = #tpu.dot_dimension_numbers<[1], [0], [0], [1], [0, 0, 1, 1], [], []>} : vector<8x32xf32>, vector<32x128xf32>, vector<8x128xf32> -> vector<8x128xf32>
    %48 = arith.addf %46, %47 : vector<8x128xf32>
    %49 = vector.extract_strided_slice %48 {offsets = [0, 0], sizes = [8, 32], strides = [1, 1]} : vector<8x128xf32> to vector<8x32xf32>
    %50 = arith.negf %49 : vector<8x32xf32>
    %51 = math.exp %50 : vector<8x32xf32>
    %cst_37 = arith.constant 1.000000e+00 : f32
    %52 = vector.broadcast %cst_37 : f32 to vector<8x32xf32>
    %53 = arith.addf %52, %51 : vector<8x32xf32>
    %54 = arith.divf %52, %53 : vector<8x32xf32>
    %55 = vector.extract_strided_slice %48 {offsets = [0, 32], sizes = [8, 32], strides = [1, 1]} : vector<8x128xf32> to vector<8x32xf32>
    %56 = arith.negf %55 : vector<8x32xf32>
    %57 = math.exp %56 : vector<8x32xf32>
    %cst_38 = arith.constant 1.000000e+00 : f32
    %58 = vector.broadcast %cst_38 : f32 to vector<8x32xf32>
    %59 = arith.addf %58, %57 : vector<8x32xf32>
    %60 = arith.divf %58, %59 : vector<8x32xf32>
    %61 = vector.extract_strided_slice %48 {offsets = [0, 64], sizes = [8, 32], strides = [1, 1]} : vector<8x128xf32> to vector<8x32xf32>
    %62 = math.tanh %61 : vector<8x32xf32>
    %63 = vector.extract_strided_slice %48 {offsets = [0, 96], sizes = [8, 32], strides = [1, 1]} : vector<8x128xf32> to vector<8x32xf32>
    %64 = arith.negf %63 : vector<8x32xf32>
    %65 = math.exp %64 : vector<8x32xf32>
    %cst_39 = arith.constant 1.000000e+00 : f32
    %66 = vector.broadcast %cst_39 : f32 to vector<8x32xf32>
    %67 = arith.addf %66, %65 : vector<8x32xf32>
    %68 = arith.divf %66, %67 : vector<8x32xf32>
    %69 = arith.mulf %60, %45 : vector<8x32xf32>
    %70 = arith.mulf %54, %62 : vector<8x32xf32>
    %71 = arith.addf %69, %70 : vector<8x32xf32>
    %72 = math.tanh %71 : vector<8x32xf32>
    %73 = arith.mulf %68, %72 : vector<8x32xf32>
    %74 = tpu.concatenate %73, %45 in 1 : vector<8x32xf32>, vector<8x32xf32> -> vector<8x64xf32>
    %cst_40 = arith.constant dense<0.000000e+00> : vector<8x128xf32>
    %75 = tpu.matmul %74, %3, %cst_40 {dimension_numbers = #tpu.dot_dimension_numbers<[1], [0], [0], [1], [0, 0, 1, 1], [], []>} : vector<8x64xf32>, vector<64x128xf32>, vector<8x128xf32> -> vector<8x128xf32>
    %76 = vector.broadcast %4 : vector<1x128xf32> to vector<8x128xf32>
    %77 = arith.addf %75, %76 : vector<8x128xf32>
    %78 = vector.extract_strided_slice %77 {offsets = [0, 0], sizes = [8, 32], strides = [1, 1]} : vector<8x128xf32> to vector<8x32xf32>
    %79 = arith.negf %78 : vector<8x32xf32>
    %80 = math.exp %79 : vector<8x32xf32>
    %cst_41 = arith.constant 1.000000e+00 : f32
    %81 = vector.broadcast %cst_41 : f32 to vector<8x32xf32>
    %82 = arith.addf %81, %80 : vector<8x32xf32>
    %83 = arith.divf %81, %82 : vector<8x32xf32>
    %84 = vector.extract_strided_slice %77 {offsets = [0, 32], sizes = [8, 32], strides = [1, 1]} : vector<8x128xf32> to vector<8x32xf32>
    %85 = arith.negf %84 : vector<8x32xf32>
    %86 = math.exp %85 : vector<8x32xf32>
    %cst_42 = arith.constant 1.000000e+00 : f32
    %87 = vector.broadcast %cst_42 : f32 to vector<8x32xf32>
    %88 = arith.addf %87, %86 : vector<8x32xf32>
    %89 = arith.divf %87, %88 : vector<8x32xf32>
    %90 = vector.extract_strided_slice %77 {offsets = [0, 64], sizes = [8, 32], strides = [1, 1]} : vector<8x128xf32> to vector<8x32xf32>
    %91 = math.tanh %90 : vector<8x32xf32>
    %92 = vector.extract_strided_slice %77 {offsets = [0, 96], sizes = [8, 32], strides = [1, 1]} : vector<8x128xf32> to vector<8x32xf32>
    %93 = arith.negf %92 : vector<8x32xf32>
    %94 = math.exp %93 : vector<8x32xf32>
    %cst_43 = arith.constant 1.000000e+00 : f32
    %95 = vector.broadcast %cst_43 : f32 to vector<8x32xf32>
    %96 = arith.addf %95, %94 : vector<8x32xf32>
    %97 = arith.divf %95, %96 : vector<8x32xf32>
    %98 = arith.mulf %89, %45 : vector<8x32xf32>
    %99 = arith.mulf %83, %91 : vector<8x32xf32>
    %100 = arith.addf %98, %99 : vector<8x32xf32>
    %101 = math.tanh %100 : vector<8x32xf32>
    %102 = arith.mulf %97, %101 : vector<8x32xf32>
    %c8_44 = arith.constant 8 : index
    %c0_45 = arith.constant 0 : index
    %103 = vector.load %arg11[%c8_44, %c0_45] : memref<64x128xf32, #tpu.memory_space<vmem>>, vector<8x128xf32>
    %cst_46 = arith.constant dense<0.000000e+00> : vector<8x128xf32>
    %104 = tpu.matmul %73, %0, %cst_46 {dimension_numbers = #tpu.dot_dimension_numbers<[1], [0], [0], [1], [0, 0, 1, 1], [], []>} : vector<8x32xf32>, vector<32x128xf32>, vector<8x128xf32> -> vector<8x128xf32>
    %105 = arith.addf %103, %104 : vector<8x128xf32>
    %106 = vector.extract_strided_slice %105 {offsets = [0, 0], sizes = [8, 32], strides = [1, 1]} : vector<8x128xf32> to vector<8x32xf32>
    %107 = arith.negf %106 : vector<8x32xf32>
    %108 = math.exp %107 : vector<8x32xf32>
    %cst_47 = arith.constant 1.000000e+00 : f32
    %109 = vector.broadcast %cst_47 : f32 to vector<8x32xf32>
    %110 = arith.addf %109, %108 : vector<8x32xf32>
    %111 = arith.divf %109, %110 : vector<8x32xf32>
    %112 = vector.extract_strided_slice %105 {offsets = [0, 32], sizes = [8, 32], strides = [1, 1]} : vector<8x128xf32> to vector<8x32xf32>
    %113 = arith.negf %112 : vector<8x32xf32>
    %114 = math.exp %113 : vector<8x32xf32>
    %cst_48 = arith.constant 1.000000e+00 : f32
    %115 = vector.broadcast %cst_48 : f32 to vector<8x32xf32>
    %116 = arith.addf %115, %114 : vector<8x32xf32>
    %117 = arith.divf %115, %116 : vector<8x32xf32>
    %118 = vector.extract_strided_slice %105 {offsets = [0, 64], sizes = [8, 32], strides = [1, 1]} : vector<8x128xf32> to vector<8x32xf32>
    %119 = math.tanh %118 : vector<8x32xf32>
    %120 = vector.extract_strided_slice %105 {offsets = [0, 96], sizes = [8, 32], strides = [1, 1]} : vector<8x128xf32> to vector<8x32xf32>
    %121 = arith.negf %120 : vector<8x32xf32>
    %122 = math.exp %121 : vector<8x32xf32>
    %cst_49 = arith.constant 1.000000e+00 : f32
    %123 = vector.broadcast %cst_49 : f32 to vector<8x32xf32>
    %124 = arith.addf %123, %122 : vector<8x32xf32>
    %125 = arith.divf %123, %124 : vector<8x32xf32>
    %126 = arith.mulf %117, %71 : vector<8x32xf32>
    %127 = arith.mulf %111, %119 : vector<8x32xf32>
    %128 = arith.addf %126, %127 : vector<8x32xf32>
    %129 = math.tanh %128 : vector<8x32xf32>
    %130 = arith.mulf %125, %129 : vector<8x32xf32>
    %131 = tpu.concatenate %130, %102 in 1 : vector<8x32xf32>, vector<8x32xf32> -> vector<8x64xf32>
    %cst_50 = arith.constant dense<0.000000e+00> : vector<8x128xf32>
    %132 = tpu.matmul %131, %3, %cst_50 {dimension_numbers = #tpu.dot_dimension_numbers<[1], [0], [0], [1], [0, 0, 1, 1], [], []>} : vector<8x64xf32>, vector<64x128xf32>, vector<8x128xf32> -> vector<8x128xf32>
    %133 = vector.broadcast %4 : vector<1x128xf32> to vector<8x128xf32>
    %134 = arith.addf %132, %133 : vector<8x128xf32>
    %135 = vector.extract_strided_slice %134 {offsets = [0, 0], sizes = [8, 32], strides = [1, 1]} : vector<8x128xf32> to vector<8x32xf32>
    %136 = arith.negf %135 : vector<8x32xf32>
    %137 = math.exp %136 : vector<8x32xf32>
    %cst_51 = arith.constant 1.000000e+00 : f32
    %138 = vector.broadcast %cst_51 : f32 to vector<8x32xf32>
    %139 = arith.addf %138, %137 : vector<8x32xf32>
    %140 = arith.divf %138, %139 : vector<8x32xf32>
    %141 = vector.extract_strided_slice %134 {offsets = [0, 32], sizes = [8, 32], strides = [1, 1]} : vector<8x128xf32> to vector<8x32xf32>
    %142 = arith.negf %141 : vector<8x32xf32>
    %143 = math.exp %142 : vector<8x32xf32>
    %cst_52 = arith.constant 1.000000e+00 : f32
    %144 = vector.broadcast %cst_52 : f32 to vector<8x32xf32>
    %145 = arith.addf %144, %143 : vector<8x32xf32>
    %146 = arith.divf %144, %145 : vector<8x32xf32>
    %147 = vector.extract_strided_slice %134 {offsets = [0, 64], sizes = [8, 32], strides = [1, 1]} : vector<8x128xf32> to vector<8x32xf32>
    %148 = math.tanh %147 : vector<8x32xf32>
    %149 = vector.extract_strided_slice %134 {offsets = [0, 96], sizes = [8, 32], strides = [1, 1]} : vector<8x128xf32> to vector<8x32xf32>
    %150 = arith.negf %149 : vector<8x32xf32>
    %151 = math.exp %150 : vector<8x32xf32>
    %cst_53 = arith.constant 1.000000e+00 : f32
    %152 = vector.broadcast %cst_53 : f32 to vector<8x32xf32>
    %153 = arith.addf %152, %151 : vector<8x32xf32>
    %154 = arith.divf %152, %153 : vector<8x32xf32>
    %155 = arith.mulf %146, %100 : vector<8x32xf32>
    %156 = arith.mulf %140, %148 : vector<8x32xf32>
    %157 = arith.addf %155, %156 : vector<8x32xf32>
    %158 = math.tanh %157 : vector<8x32xf32>
    %159 = arith.mulf %154, %158 : vector<8x32xf32>
    %c16_54 = arith.constant 16 : index
    %c0_55 = arith.constant 0 : index
    %160 = vector.load %arg11[%c16_54, %c0_55] : memref<64x128xf32, #tpu.memory_space<vmem>>, vector<8x128xf32>
    %cst_56 = arith.constant dense<0.000000e+00> : vector<8x128xf32>
    %161 = tpu.matmul %130, %0, %cst_56 {dimension_numbers = #tpu.dot_dimension_numbers<[1], [0], [0], [1], [0, 0, 1, 1], [], []>} : vector<8x32xf32>, vector<32x128xf32>, vector<8x128xf32> -> vector<8x128xf32>
    %162 = arith.addf %160, %161 : vector<8x128xf32>
    %163 = vector.extract_strided_slice %162 {offsets = [0, 0], sizes = [8, 32], strides = [1, 1]} : vector<8x128xf32> to vector<8x32xf32>
    %164 = arith.negf %163 : vector<8x32xf32>
    %165 = math.exp %164 : vector<8x32xf32>
    %cst_57 = arith.constant 1.000000e+00 : f32
    %166 = vector.broadcast %cst_57 : f32 to vector<8x32xf32>
    %167 = arith.addf %166, %165 : vector<8x32xf32>
    %168 = arith.divf %166, %167 : vector<8x32xf32>
    %169 = vector.extract_strided_slice %162 {offsets = [0, 32], sizes = [8, 32], strides = [1, 1]} : vector<8x128xf32> to vector<8x32xf32>
    %170 = arith.negf %169 : vector<8x32xf32>
    %171 = math.exp %170 : vector<8x32xf32>
    %cst_58 = arith.constant 1.000000e+00 : f32
    %172 = vector.broadcast %cst_58 : f32 to vector<8x32xf32>
    %173 = arith.addf %172, %171 : vector<8x32xf32>
    %174 = arith.divf %172, %173 : vector<8x32xf32>
    %175 = vector.extract_strided_slice %162 {offsets = [0, 64], sizes = [8, 32], strides = [1, 1]} : vector<8x128xf32> to vector<8x32xf32>
    %176 = math.tanh %175 : vector<8x32xf32>
    %177 = vector.extract_strided_slice %162 {offsets = [0, 96], sizes = [8, 32], strides = [1, 1]} : vector<8x128xf32> to vector<8x32xf32>
    %178 = arith.negf %177 : vector<8x32xf32>
    %179 = math.exp %178 : vector<8x32xf32>
    %cst_59 = arith.constant 1.000000e+00 : f32
    %180 = vector.broadcast %cst_59 : f32 to vector<8x32xf32>
    %181 = arith.addf %180, %179 : vector<8x32xf32>
    %182 = arith.divf %180, %181 : vector<8x32xf32>
    %183 = arith.mulf %174, %128 : vector<8x32xf32>
    %184 = arith.mulf %168, %176 : vector<8x32xf32>
    %185 = arith.addf %183, %184 : vector<8x32xf32>
    %186 = math.tanh %185 : vector<8x32xf32>
    %187 = arith.mulf %182, %186 : vector<8x32xf32>
    %188 = tpu.concatenate %187, %159 in 1 : vector<8x32xf32>, vector<8x32xf32> -> vector<8x64xf32>
    %cst_60 = arith.constant dense<0.000000e+00> : vector<8x128xf32>
    %189 = tpu.matmul %188, %3, %cst_60 {dimension_numbers = #tpu.dot_dimension_numbers<[1], [0], [0], [1], [0, 0, 1, 1], [], []>} : vector<8x64xf32>, vector<64x128xf32>, vector<8x128xf32> -> vector<8x128xf32>
    %190 = vector.broadcast %4 : vector<1x128xf32> to vector<8x128xf32>
    %191 = arith.addf %189, %190 : vector<8x128xf32>
    %192 = vector.extract_strided_slice %191 {offsets = [0, 0], sizes = [8, 32], strides = [1, 1]} : vector<8x128xf32> to vector<8x32xf32>
    %193 = arith.negf %192 : vector<8x32xf32>
    %194 = math.exp %193 : vector<8x32xf32>
    %cst_61 = arith.constant 1.000000e+00 : f32
    %195 = vector.broadcast %cst_61 : f32 to vector<8x32xf32>
    %196 = arith.addf %195, %194 : vector<8x32xf32>
    %197 = arith.divf %195, %196 : vector<8x32xf32>
    %198 = vector.extract_strided_slice %191 {offsets = [0, 32], sizes = [8, 32], strides = [1, 1]} : vector<8x128xf32> to vector<8x32xf32>
    %199 = arith.negf %198 : vector<8x32xf32>
    %200 = math.exp %199 : vector<8x32xf32>
    %cst_62 = arith.constant 1.000000e+00 : f32
    %201 = vector.broadcast %cst_62 : f32 to vector<8x32xf32>
    %202 = arith.addf %201, %200 : vector<8x32xf32>
    %203 = arith.divf %201, %202 : vector<8x32xf32>
    %204 = vector.extract_strided_slice %191 {offsets = [0, 64], sizes = [8, 32], strides = [1, 1]} : vector<8x128xf32> to vector<8x32xf32>
    %205 = math.tanh %204 : vector<8x32xf32>
    %206 = vector.extract_strided_slice %191 {offsets = [0, 96], sizes = [8, 32], strides = [1, 1]} : vector<8x128xf32> to vector<8x32xf32>
    %207 = arith.negf %206 : vector<8x32xf32>
    %208 = math.exp %207 : vector<8x32xf32>
    %cst_63 = arith.constant 1.000000e+00 : f32
    %209 = vector.broadcast %cst_63 : f32 to vector<8x32xf32>
    %210 = arith.addf %209, %208 : vector<8x32xf32>
    %211 = arith.divf %209, %210 : vector<8x32xf32>
    %212 = arith.mulf %203, %157 : vector<8x32xf32>
    %213 = arith.mulf %197, %205 : vector<8x32xf32>
    %214 = arith.addf %212, %213 : vector<8x32xf32>
    %215 = math.tanh %214 : vector<8x32xf32>
    %216 = arith.mulf %211, %215 : vector<8x32xf32>
    %c24_64 = arith.constant 24 : index
    %c0_65 = arith.constant 0 : index
    %217 = vector.load %arg11[%c24_64, %c0_65] : memref<64x128xf32, #tpu.memory_space<vmem>>, vector<8x128xf32>
    %cst_66 = arith.constant dense<0.000000e+00> : vector<8x128xf32>
    %218 = tpu.matmul %187, %0, %cst_66 {dimension_numbers = #tpu.dot_dimension_numbers<[1], [0], [0], [1], [0, 0, 1, 1], [], []>} : vector<8x32xf32>, vector<32x128xf32>, vector<8x128xf32> -> vector<8x128xf32>
    %219 = arith.addf %217, %218 : vector<8x128xf32>
    %220 = vector.extract_strided_slice %219 {offsets = [0, 0], sizes = [8, 32], strides = [1, 1]} : vector<8x128xf32> to vector<8x32xf32>
    %221 = arith.negf %220 : vector<8x32xf32>
    %222 = math.exp %221 : vector<8x32xf32>
    %cst_67 = arith.constant 1.000000e+00 : f32
    %223 = vector.broadcast %cst_67 : f32 to vector<8x32xf32>
    %224 = arith.addf %223, %222 : vector<8x32xf32>
    %225 = arith.divf %223, %224 : vector<8x32xf32>
    %226 = vector.extract_strided_slice %219 {offsets = [0, 32], sizes = [8, 32], strides = [1, 1]} : vector<8x128xf32> to vector<8x32xf32>
    %227 = arith.negf %226 : vector<8x32xf32>
    %228 = math.exp %227 : vector<8x32xf32>
    %cst_68 = arith.constant 1.000000e+00 : f32
    %229 = vector.broadcast %cst_68 : f32 to vector<8x32xf32>
    %230 = arith.addf %229, %228 : vector<8x32xf32>
    %231 = arith.divf %229, %230 : vector<8x32xf32>
    %232 = vector.extract_strided_slice %219 {offsets = [0, 64], sizes = [8, 32], strides = [1, 1]} : vector<8x128xf32> to vector<8x32xf32>
    %233 = math.tanh %232 : vector<8x32xf32>
    %234 = vector.extract_strided_slice %219 {offsets = [0, 96], sizes = [8, 32], strides = [1, 1]} : vector<8x128xf32> to vector<8x32xf32>
    %235 = arith.negf %234 : vector<8x32xf32>
    %236 = math.exp %235 : vector<8x32xf32>
    %cst_69 = arith.constant 1.000000e+00 : f32
    %237 = vector.broadcast %cst_69 : f32 to vector<8x32xf32>
    %238 = arith.addf %237, %236 : vector<8x32xf32>
    %239 = arith.divf %237, %238 : vector<8x32xf32>
    %240 = arith.mulf %231, %185 : vector<8x32xf32>
    %241 = arith.mulf %225, %233 : vector<8x32xf32>
    %242 = arith.addf %240, %241 : vector<8x32xf32>
    %243 = math.tanh %242 : vector<8x32xf32>
    %244 = arith.mulf %239, %243 : vector<8x32xf32>
    %245 = tpu.concatenate %244, %216 in 1 : vector<8x32xf32>, vector<8x32xf32> -> vector<8x64xf32>
    %cst_70 = arith.constant dense<0.000000e+00> : vector<8x128xf32>
    %246 = tpu.matmul %245, %3, %cst_70 {dimension_numbers = #tpu.dot_dimension_numbers<[1], [0], [0], [1], [0, 0, 1, 1], [], []>} : vector<8x64xf32>, vector<64x128xf32>, vector<8x128xf32> -> vector<8x128xf32>
    %247 = vector.broadcast %4 : vector<1x128xf32> to vector<8x128xf32>
    %248 = arith.addf %246, %247 : vector<8x128xf32>
    %249 = vector.extract_strided_slice %248 {offsets = [0, 0], sizes = [8, 32], strides = [1, 1]} : vector<8x128xf32> to vector<8x32xf32>
    %250 = arith.negf %249 : vector<8x32xf32>
    %251 = math.exp %250 : vector<8x32xf32>
    %cst_71 = arith.constant 1.000000e+00 : f32
    %252 = vector.broadcast %cst_71 : f32 to vector<8x32xf32>
    %253 = arith.addf %252, %251 : vector<8x32xf32>
    %254 = arith.divf %252, %253 : vector<8x32xf32>
    %255 = vector.extract_strided_slice %248 {offsets = [0, 32], sizes = [8, 32], strides = [1, 1]} : vector<8x128xf32> to vector<8x32xf32>
    %256 = arith.negf %255 : vector<8x32xf32>
    %257 = math.exp %256 : vector<8x32xf32>
    %cst_72 = arith.constant 1.000000e+00 : f32
    %258 = vector.broadcast %cst_72 : f32 to vector<8x32xf32>
    %259 = arith.addf %258, %257 : vector<8x32xf32>
    %260 = arith.divf %258, %259 : vector<8x32xf32>
    %261 = vector.extract_strided_slice %248 {offsets = [0, 64], sizes = [8, 32], strides = [1, 1]} : vector<8x128xf32> to vector<8x32xf32>
    %262 = math.tanh %261 : vector<8x32xf32>
    %263 = vector.extract_strided_slice %248 {offsets = [0, 96], sizes = [8, 32], strides = [1, 1]} : vector<8x128xf32> to vector<8x32xf32>
    %264 = arith.negf %263 : vector<8x32xf32>
    %265 = math.exp %264 : vector<8x32xf32>
    %cst_73 = arith.constant 1.000000e+00 : f32
    %266 = vector.broadcast %cst_73 : f32 to vector<8x32xf32>
    %267 = arith.addf %266, %265 : vector<8x32xf32>
    %268 = arith.divf %266, %267 : vector<8x32xf32>
    %269 = arith.mulf %260, %214 : vector<8x32xf32>
    %270 = arith.mulf %254, %262 : vector<8x32xf32>
    %271 = arith.addf %269, %270 : vector<8x32xf32>
    %272 = math.tanh %271 : vector<8x32xf32>
    %273 = arith.mulf %268, %272 : vector<8x32xf32>
    %c32_74 = arith.constant 32 : index
    %c0_75 = arith.constant 0 : index
    %274 = vector.load %arg11[%c32_74, %c0_75] : memref<64x128xf32, #tpu.memory_space<vmem>>, vector<8x128xf32>
    %cst_76 = arith.constant dense<0.000000e+00> : vector<8x128xf32>
    %275 = tpu.matmul %244, %0, %cst_76 {dimension_numbers = #tpu.dot_dimension_numbers<[1], [0], [0], [1], [0, 0, 1, 1], [], []>} : vector<8x32xf32>, vector<32x128xf32>, vector<8x128xf32> -> vector<8x128xf32>
    %276 = arith.addf %274, %275 : vector<8x128xf32>
    %277 = vector.extract_strided_slice %276 {offsets = [0, 0], sizes = [8, 32], strides = [1, 1]} : vector<8x128xf32> to vector<8x32xf32>
    %278 = arith.negf %277 : vector<8x32xf32>
    %279 = math.exp %278 : vector<8x32xf32>
    %cst_77 = arith.constant 1.000000e+00 : f32
    %280 = vector.broadcast %cst_77 : f32 to vector<8x32xf32>
    %281 = arith.addf %280, %279 : vector<8x32xf32>
    %282 = arith.divf %280, %281 : vector<8x32xf32>
    %283 = vector.extract_strided_slice %276 {offsets = [0, 32], sizes = [8, 32], strides = [1, 1]} : vector<8x128xf32> to vector<8x32xf32>
    %284 = arith.negf %283 : vector<8x32xf32>
    %285 = math.exp %284 : vector<8x32xf32>
    %cst_78 = arith.constant 1.000000e+00 : f32
    %286 = vector.broadcast %cst_78 : f32 to vector<8x32xf32>
    %287 = arith.addf %286, %285 : vector<8x32xf32>
    %288 = arith.divf %286, %287 : vector<8x32xf32>
    %289 = vector.extract_strided_slice %276 {offsets = [0, 64], sizes = [8, 32], strides = [1, 1]} : vector<8x128xf32> to vector<8x32xf32>
    %290 = math.tanh %289 : vector<8x32xf32>
    %291 = vector.extract_strided_slice %276 {offsets = [0, 96], sizes = [8, 32], strides = [1, 1]} : vector<8x128xf32> to vector<8x32xf32>
    %292 = arith.negf %291 : vector<8x32xf32>
    %293 = math.exp %292 : vector<8x32xf32>
    %cst_79 = arith.constant 1.000000e+00 : f32
    %294 = vector.broadcast %cst_79 : f32 to vector<8x32xf32>
    %295 = arith.addf %294, %293 : vector<8x32xf32>
    %296 = arith.divf %294, %295 : vector<8x32xf32>
    %297 = arith.mulf %288, %242 : vector<8x32xf32>
    %298 = arith.mulf %282, %290 : vector<8x32xf32>
    %299 = arith.addf %297, %298 : vector<8x32xf32>
    %300 = math.tanh %299 : vector<8x32xf32>
    %301 = arith.mulf %296, %300 : vector<8x32xf32>
    %302 = tpu.concatenate %301, %273 in 1 : vector<8x32xf32>, vector<8x32xf32> -> vector<8x64xf32>
    %cst_80 = arith.constant dense<0.000000e+00> : vector<8x128xf32>
    %303 = tpu.matmul %302, %3, %cst_80 {dimension_numbers = #tpu.dot_dimension_numbers<[1], [0], [0], [1], [0, 0, 1, 1], [], []>} : vector<8x64xf32>, vector<64x128xf32>, vector<8x128xf32> -> vector<8x128xf32>
    %304 = vector.broadcast %4 : vector<1x128xf32> to vector<8x128xf32>
    %305 = arith.addf %303, %304 : vector<8x128xf32>
    %306 = vector.extract_strided_slice %305 {offsets = [0, 0], sizes = [8, 32], strides = [1, 1]} : vector<8x128xf32> to vector<8x32xf32>
    %307 = arith.negf %306 : vector<8x32xf32>
    %308 = math.exp %307 : vector<8x32xf32>
    %cst_81 = arith.constant 1.000000e+00 : f32
    %309 = vector.broadcast %cst_81 : f32 to vector<8x32xf32>
    %310 = arith.addf %309, %308 : vector<8x32xf32>
    %311 = arith.divf %309, %310 : vector<8x32xf32>
    %312 = vector.extract_strided_slice %305 {offsets = [0, 32], sizes = [8, 32], strides = [1, 1]} : vector<8x128xf32> to vector<8x32xf32>
    %313 = arith.negf %312 : vector<8x32xf32>
    %314 = math.exp %313 : vector<8x32xf32>
    %cst_82 = arith.constant 1.000000e+00 : f32
    %315 = vector.broadcast %cst_82 : f32 to vector<8x32xf32>
    %316 = arith.addf %315, %314 : vector<8x32xf32>
    %317 = arith.divf %315, %316 : vector<8x32xf32>
    %318 = vector.extract_strided_slice %305 {offsets = [0, 64], sizes = [8, 32], strides = [1, 1]} : vector<8x128xf32> to vector<8x32xf32>
    %319 = math.tanh %318 : vector<8x32xf32>
    %320 = vector.extract_strided_slice %305 {offsets = [0, 96], sizes = [8, 32], strides = [1, 1]} : vector<8x128xf32> to vector<8x32xf32>
    %321 = arith.negf %320 : vector<8x32xf32>
    %322 = math.exp %321 : vector<8x32xf32>
    %cst_83 = arith.constant 1.000000e+00 : f32
    %323 = vector.broadcast %cst_83 : f32 to vector<8x32xf32>
    %324 = arith.addf %323, %322 : vector<8x32xf32>
    %325 = arith.divf %323, %324 : vector<8x32xf32>
    %326 = arith.mulf %317, %271 : vector<8x32xf32>
    %327 = arith.mulf %311, %319 : vector<8x32xf32>
    %328 = arith.addf %326, %327 : vector<8x32xf32>
    %329 = math.tanh %328 : vector<8x32xf32>
    %330 = arith.mulf %325, %329 : vector<8x32xf32>
    %c40_84 = arith.constant 40 : index
    %c0_85 = arith.constant 0 : index
    %331 = vector.load %arg11[%c40_84, %c0_85] : memref<64x128xf32, #tpu.memory_space<vmem>>, vector<8x128xf32>
    %cst_86 = arith.constant dense<0.000000e+00> : vector<8x128xf32>
    %332 = tpu.matmul %301, %0, %cst_86 {dimension_numbers = #tpu.dot_dimension_numbers<[1], [0], [0], [1], [0, 0, 1, 1], [], []>} : vector<8x32xf32>, vector<32x128xf32>, vector<8x128xf32> -> vector<8x128xf32>
    %333 = arith.addf %331, %332 : vector<8x128xf32>
    %334 = vector.extract_strided_slice %333 {offsets = [0, 0], sizes = [8, 32], strides = [1, 1]} : vector<8x128xf32> to vector<8x32xf32>
    %335 = arith.negf %334 : vector<8x32xf32>
    %336 = math.exp %335 : vector<8x32xf32>
    %cst_87 = arith.constant 1.000000e+00 : f32
    %337 = vector.broadcast %cst_87 : f32 to vector<8x32xf32>
    %338 = arith.addf %337, %336 : vector<8x32xf32>
    %339 = arith.divf %337, %338 : vector<8x32xf32>
    %340 = vector.extract_strided_slice %333 {offsets = [0, 32], sizes = [8, 32], strides = [1, 1]} : vector<8x128xf32> to vector<8x32xf32>
    %341 = arith.negf %340 : vector<8x32xf32>
    %342 = math.exp %341 : vector<8x32xf32>
    %cst_88 = arith.constant 1.000000e+00 : f32
    %343 = vector.broadcast %cst_88 : f32 to vector<8x32xf32>
    %344 = arith.addf %343, %342 : vector<8x32xf32>
    %345 = arith.divf %343, %344 : vector<8x32xf32>
    %346 = vector.extract_strided_slice %333 {offsets = [0, 64], sizes = [8, 32], strides = [1, 1]} : vector<8x128xf32> to vector<8x32xf32>
    %347 = math.tanh %346 : vector<8x32xf32>
    %348 = vector.extract_strided_slice %333 {offsets = [0, 96], sizes = [8, 32], strides = [1, 1]} : vector<8x128xf32> to vector<8x32xf32>
    %349 = arith.negf %348 : vector<8x32xf32>
    %350 = math.exp %349 : vector<8x32xf32>
    %cst_89 = arith.constant 1.000000e+00 : f32
    %351 = vector.broadcast %cst_89 : f32 to vector<8x32xf32>
    %352 = arith.addf %351, %350 : vector<8x32xf32>
    %353 = arith.divf %351, %352 : vector<8x32xf32>
    %354 = arith.mulf %345, %299 : vector<8x32xf32>
    %355 = arith.mulf %339, %347 : vector<8x32xf32>
    %356 = arith.addf %354, %355 : vector<8x32xf32>
    %357 = math.tanh %356 : vector<8x32xf32>
    %358 = arith.mulf %353, %357 : vector<8x32xf32>
    %359 = tpu.concatenate %358, %330 in 1 : vector<8x32xf32>, vector<8x32xf32> -> vector<8x64xf32>
    %cst_90 = arith.constant dense<0.000000e+00> : vector<8x128xf32>
    %360 = tpu.matmul %359, %3, %cst_90 {dimension_numbers = #tpu.dot_dimension_numbers<[1], [0], [0], [1], [0, 0, 1, 1], [], []>} : vector<8x64xf32>, vector<64x128xf32>, vector<8x128xf32> -> vector<8x128xf32>
    %361 = vector.broadcast %4 : vector<1x128xf32> to vector<8x128xf32>
    %362 = arith.addf %360, %361 : vector<8x128xf32>
    %363 = vector.extract_strided_slice %362 {offsets = [0, 0], sizes = [8, 32], strides = [1, 1]} : vector<8x128xf32> to vector<8x32xf32>
    %364 = arith.negf %363 : vector<8x32xf32>
    %365 = math.exp %364 : vector<8x32xf32>
    %cst_91 = arith.constant 1.000000e+00 : f32
    %366 = vector.broadcast %cst_91 : f32 to vector<8x32xf32>
    %367 = arith.addf %366, %365 : vector<8x32xf32>
    %368 = arith.divf %366, %367 : vector<8x32xf32>
    %369 = vector.extract_strided_slice %362 {offsets = [0, 32], sizes = [8, 32], strides = [1, 1]} : vector<8x128xf32> to vector<8x32xf32>
    %370 = arith.negf %369 : vector<8x32xf32>
    %371 = math.exp %370 : vector<8x32xf32>
    %cst_92 = arith.constant 1.000000e+00 : f32
    %372 = vector.broadcast %cst_92 : f32 to vector<8x32xf32>
    %373 = arith.addf %372, %371 : vector<8x32xf32>
    %374 = arith.divf %372, %373 : vector<8x32xf32>
    %375 = vector.extract_strided_slice %362 {offsets = [0, 64], sizes = [8, 32], strides = [1, 1]} : vector<8x128xf32> to vector<8x32xf32>
    %376 = math.tanh %375 : vector<8x32xf32>
    %377 = vector.extract_strided_slice %362 {offsets = [0, 96], sizes = [8, 32], strides = [1, 1]} : vector<8x128xf32> to vector<8x32xf32>
    %378 = arith.negf %377 : vector<8x32xf32>
    %379 = math.exp %378 : vector<8x32xf32>
    %cst_93 = arith.constant 1.000000e+00 : f32
    %380 = vector.broadcast %cst_93 : f32 to vector<8x32xf32>
    %381 = arith.addf %380, %379 : vector<8x32xf32>
    %382 = arith.divf %380, %381 : vector<8x32xf32>
    %383 = arith.mulf %374, %328 : vector<8x32xf32>
    %384 = arith.mulf %368, %376 : vector<8x32xf32>
    %385 = arith.addf %383, %384 : vector<8x32xf32>
    %386 = math.tanh %385 : vector<8x32xf32>
    %387 = arith.mulf %382, %386 : vector<8x32xf32>
    %c48_94 = arith.constant 48 : index
    %c0_95 = arith.constant 0 : index
    %388 = vector.load %arg11[%c48_94, %c0_95] : memref<64x128xf32, #tpu.memory_space<vmem>>, vector<8x128xf32>
    %cst_96 = arith.constant dense<0.000000e+00> : vector<8x128xf32>
    %389 = tpu.matmul %358, %0, %cst_96 {dimension_numbers = #tpu.dot_dimension_numbers<[1], [0], [0], [1], [0, 0, 1, 1], [], []>} : vector<8x32xf32>, vector<32x128xf32>, vector<8x128xf32> -> vector<8x128xf32>
    %390 = arith.addf %388, %389 : vector<8x128xf32>
    %391 = vector.extract_strided_slice %390 {offsets = [0, 0], sizes = [8, 32], strides = [1, 1]} : vector<8x128xf32> to vector<8x32xf32>
    %392 = arith.negf %391 : vector<8x32xf32>
    %393 = math.exp %392 : vector<8x32xf32>
    %cst_97 = arith.constant 1.000000e+00 : f32
    %394 = vector.broadcast %cst_97 : f32 to vector<8x32xf32>
    %395 = arith.addf %394, %393 : vector<8x32xf32>
    %396 = arith.divf %394, %395 : vector<8x32xf32>
    %397 = vector.extract_strided_slice %390 {offsets = [0, 32], sizes = [8, 32], strides = [1, 1]} : vector<8x128xf32> to vector<8x32xf32>
    %398 = arith.negf %397 : vector<8x32xf32>
    %399 = math.exp %398 : vector<8x32xf32>
    %cst_98 = arith.constant 1.000000e+00 : f32
    %400 = vector.broadcast %cst_98 : f32 to vector<8x32xf32>
    %401 = arith.addf %400, %399 : vector<8x32xf32>
    %402 = arith.divf %400, %401 : vector<8x32xf32>
    %403 = vector.extract_strided_slice %390 {offsets = [0, 64], sizes = [8, 32], strides = [1, 1]} : vector<8x128xf32> to vector<8x32xf32>
    %404 = math.tanh %403 : vector<8x32xf32>
    %405 = vector.extract_strided_slice %390 {offsets = [0, 96], sizes = [8, 32], strides = [1, 1]} : vector<8x128xf32> to vector<8x32xf32>
    %406 = arith.negf %405 : vector<8x32xf32>
    %407 = math.exp %406 : vector<8x32xf32>
    %cst_99 = arith.constant 1.000000e+00 : f32
    %408 = vector.broadcast %cst_99 : f32 to vector<8x32xf32>
    %409 = arith.addf %408, %407 : vector<8x32xf32>
    %410 = arith.divf %408, %409 : vector<8x32xf32>
    %411 = arith.mulf %402, %356 : vector<8x32xf32>
    %412 = arith.mulf %396, %404 : vector<8x32xf32>
    %413 = arith.addf %411, %412 : vector<8x32xf32>
    %414 = math.tanh %413 : vector<8x32xf32>
    %415 = arith.mulf %410, %414 : vector<8x32xf32>
    %416 = tpu.concatenate %415, %387 in 1 : vector<8x32xf32>, vector<8x32xf32> -> vector<8x64xf32>
    %cst_100 = arith.constant dense<0.000000e+00> : vector<8x128xf32>
    %417 = tpu.matmul %416, %3, %cst_100 {dimension_numbers = #tpu.dot_dimension_numbers<[1], [0], [0], [1], [0, 0, 1, 1], [], []>} : vector<8x64xf32>, vector<64x128xf32>, vector<8x128xf32> -> vector<8x128xf32>
    %418 = vector.broadcast %4 : vector<1x128xf32> to vector<8x128xf32>
    %419 = arith.addf %417, %418 : vector<8x128xf32>
    %420 = vector.extract_strided_slice %419 {offsets = [0, 0], sizes = [8, 32], strides = [1, 1]} : vector<8x128xf32> to vector<8x32xf32>
    %421 = arith.negf %420 : vector<8x32xf32>
    %422 = math.exp %421 : vector<8x32xf32>
    %cst_101 = arith.constant 1.000000e+00 : f32
    %423 = vector.broadcast %cst_101 : f32 to vector<8x32xf32>
    %424 = arith.addf %423, %422 : vector<8x32xf32>
    %425 = arith.divf %423, %424 : vector<8x32xf32>
    %426 = vector.extract_strided_slice %419 {offsets = [0, 32], sizes = [8, 32], strides = [1, 1]} : vector<8x128xf32> to vector<8x32xf32>
    %427 = arith.negf %426 : vector<8x32xf32>
    %428 = math.exp %427 : vector<8x32xf32>
    %cst_102 = arith.constant 1.000000e+00 : f32
    %429 = vector.broadcast %cst_102 : f32 to vector<8x32xf32>
    %430 = arith.addf %429, %428 : vector<8x32xf32>
    %431 = arith.divf %429, %430 : vector<8x32xf32>
    %432 = vector.extract_strided_slice %419 {offsets = [0, 64], sizes = [8, 32], strides = [1, 1]} : vector<8x128xf32> to vector<8x32xf32>
    %433 = math.tanh %432 : vector<8x32xf32>
    %434 = vector.extract_strided_slice %419 {offsets = [0, 96], sizes = [8, 32], strides = [1, 1]} : vector<8x128xf32> to vector<8x32xf32>
    %435 = arith.negf %434 : vector<8x32xf32>
    %436 = math.exp %435 : vector<8x32xf32>
    %cst_103 = arith.constant 1.000000e+00 : f32
    %437 = vector.broadcast %cst_103 : f32 to vector<8x32xf32>
    %438 = arith.addf %437, %436 : vector<8x32xf32>
    %439 = arith.divf %437, %438 : vector<8x32xf32>
    %440 = arith.mulf %431, %385 : vector<8x32xf32>
    %441 = arith.mulf %425, %433 : vector<8x32xf32>
    %442 = arith.addf %440, %441 : vector<8x32xf32>
    %443 = math.tanh %442 : vector<8x32xf32>
    %444 = arith.mulf %439, %443 : vector<8x32xf32>
    %c56_104 = arith.constant 56 : index
    %c0_105 = arith.constant 0 : index
    %445 = vector.load %arg11[%c56_104, %c0_105] : memref<64x128xf32, #tpu.memory_space<vmem>>, vector<8x128xf32>
    %cst_106 = arith.constant dense<0.000000e+00> : vector<8x128xf32>
    %446 = tpu.matmul %415, %0, %cst_106 {dimension_numbers = #tpu.dot_dimension_numbers<[1], [0], [0], [1], [0, 0, 1, 1], [], []>} : vector<8x32xf32>, vector<32x128xf32>, vector<8x128xf32> -> vector<8x128xf32>
    %447 = arith.addf %445, %446 : vector<8x128xf32>
    %448 = vector.extract_strided_slice %447 {offsets = [0, 0], sizes = [8, 32], strides = [1, 1]} : vector<8x128xf32> to vector<8x32xf32>
    %449 = arith.negf %448 : vector<8x32xf32>
    %450 = math.exp %449 : vector<8x32xf32>
    %cst_107 = arith.constant 1.000000e+00 : f32
    %451 = vector.broadcast %cst_107 : f32 to vector<8x32xf32>
    %452 = arith.addf %451, %450 : vector<8x32xf32>
    %453 = arith.divf %451, %452 : vector<8x32xf32>
    %454 = vector.extract_strided_slice %447 {offsets = [0, 32], sizes = [8, 32], strides = [1, 1]} : vector<8x128xf32> to vector<8x32xf32>
    %455 = arith.negf %454 : vector<8x32xf32>
    %456 = math.exp %455 : vector<8x32xf32>
    %cst_108 = arith.constant 1.000000e+00 : f32
    %457 = vector.broadcast %cst_108 : f32 to vector<8x32xf32>
    %458 = arith.addf %457, %456 : vector<8x32xf32>
    %459 = arith.divf %457, %458 : vector<8x32xf32>
    %460 = vector.extract_strided_slice %447 {offsets = [0, 64], sizes = [8, 32], strides = [1, 1]} : vector<8x128xf32> to vector<8x32xf32>
    %461 = math.tanh %460 : vector<8x32xf32>
    %462 = vector.extract_strided_slice %447 {offsets = [0, 96], sizes = [8, 32], strides = [1, 1]} : vector<8x128xf32> to vector<8x32xf32>
    %463 = arith.negf %462 : vector<8x32xf32>
    %464 = math.exp %463 : vector<8x32xf32>
    %cst_109 = arith.constant 1.000000e+00 : f32
    %465 = vector.broadcast %cst_109 : f32 to vector<8x32xf32>
    %466 = arith.addf %465, %464 : vector<8x32xf32>
    %467 = arith.divf %465, %466 : vector<8x32xf32>
    %468 = arith.mulf %459, %413 : vector<8x32xf32>
    %469 = arith.mulf %453, %461 : vector<8x32xf32>
    %470 = arith.addf %468, %469 : vector<8x32xf32>
    %471 = math.tanh %470 : vector<8x32xf32>
    %472 = arith.mulf %467, %471 : vector<8x32xf32>
    %473 = tpu.concatenate %472, %444 in 1 : vector<8x32xf32>, vector<8x32xf32> -> vector<8x64xf32>
    %cst_110 = arith.constant dense<0.000000e+00> : vector<8x128xf32>
    %474 = tpu.matmul %473, %3, %cst_110 {dimension_numbers = #tpu.dot_dimension_numbers<[1], [0], [0], [1], [0, 0, 1, 1], [], []>} : vector<8x64xf32>, vector<64x128xf32>, vector<8x128xf32> -> vector<8x128xf32>
    %475 = vector.broadcast %4 : vector<1x128xf32> to vector<8x128xf32>
    %476 = arith.addf %474, %475 : vector<8x128xf32>
    %477 = vector.extract_strided_slice %476 {offsets = [0, 0], sizes = [8, 32], strides = [1, 1]} : vector<8x128xf32> to vector<8x32xf32>
    %478 = arith.negf %477 : vector<8x32xf32>
    %479 = math.exp %478 : vector<8x32xf32>
    %cst_111 = arith.constant 1.000000e+00 : f32
    %480 = vector.broadcast %cst_111 : f32 to vector<8x32xf32>
    %481 = arith.addf %480, %479 : vector<8x32xf32>
    %482 = arith.divf %480, %481 : vector<8x32xf32>
    %483 = vector.extract_strided_slice %476 {offsets = [0, 32], sizes = [8, 32], strides = [1, 1]} : vector<8x128xf32> to vector<8x32xf32>
    %484 = arith.negf %483 : vector<8x32xf32>
    %485 = math.exp %484 : vector<8x32xf32>
    %cst_112 = arith.constant 1.000000e+00 : f32
    %486 = vector.broadcast %cst_112 : f32 to vector<8x32xf32>
    %487 = arith.addf %486, %485 : vector<8x32xf32>
    %488 = arith.divf %486, %487 : vector<8x32xf32>
    %489 = vector.extract_strided_slice %476 {offsets = [0, 64], sizes = [8, 32], strides = [1, 1]} : vector<8x128xf32> to vector<8x32xf32>
    %490 = math.tanh %489 : vector<8x32xf32>
    %491 = vector.extract_strided_slice %476 {offsets = [0, 96], sizes = [8, 32], strides = [1, 1]} : vector<8x128xf32> to vector<8x32xf32>
    %492 = arith.negf %491 : vector<8x32xf32>
    %493 = math.exp %492 : vector<8x32xf32>
    %cst_113 = arith.constant 1.000000e+00 : f32
    %494 = vector.broadcast %cst_113 : f32 to vector<8x32xf32>
    %495 = arith.addf %494, %493 : vector<8x32xf32>
    %496 = arith.divf %494, %495 : vector<8x32xf32>
    %497 = arith.mulf %488, %442 : vector<8x32xf32>
    %498 = arith.mulf %482, %490 : vector<8x32xf32>
    %499 = arith.addf %497, %498 : vector<8x32xf32>
    %500 = math.tanh %499 : vector<8x32xf32>
    %501 = arith.mulf %496, %500 : vector<8x32xf32>
    %c0_114 = arith.constant 0 : index
    %c0_115 = arith.constant 0 : index
    %502 = vector.load %arg8[%c0_114, %c0_115] : memref<1x32xf32, #tpu.memory_space<vmem>>, vector<1x32xf32>
    %503 = vector.broadcast %502 : vector<1x32xf32> to vector<8x32xf32>
    %504 = arith.mulf %501, %503 : vector<8x32xf32>
    %cst_116 = arith.constant dense<0.000000e+00> : vector<8xf32>
    %505 = vector.multi_reduction <add>, %504, %cst_116 [1] : vector<8x32xf32> to vector<8xf32>
    %506 = vector.shape_cast %505 : vector<8xf32> to vector<8x1xf32>
    %c0_117 = arith.constant 0 : index
    %c0_118 = arith.constant 0 : index
    %507 = vector.load %arg9[%c0_117, %c0_118] : memref<1x1xf32, #tpu.memory_space<vmem>>, vector<1x1xf32>
    %508 = vector.broadcast %507 : vector<1x1xf32> to vector<8x1xf32>
    %509 = arith.addf %506, %508 : vector<8x1xf32>
    %510 = vector.extract_strided_slice %509 {offsets = [0, 0], sizes = [2, 1], strides = [1, 1]} : vector<8x1xf32> to vector<2x1xf32>
    %c0_119 = arith.constant 0 : index
    %c0_120 = arith.constant 0 : index
    %511 = vector.load %arg10[%c0_119, %c0_120] : memref<2x1xf32, #tpu.memory_space<vmem>>, vector<2x1xf32>
    tpu.vector_store %arg10[%c0_119, %c0_120], %510 {strides = array<i32>} : memref<2x1xf32, #tpu.memory_space<vmem>>, vector<2x1xf32>,
    return
  }
  func.func @transform_0(%arg0: i32) -> (i32, i32) {
    %c0_i32 = arith.constant 0 : i32
    %c0_i32_0 = arith.constant 0 : i32
    %c0_i32_1 = arith.constant 0 : i32
    return %c0_i32, %c0_i32_0 : i32, i32
  }
  func.func @transform_1(%arg0: i32) -> (i32, i32) {
    %c0_i32 = arith.constant 0 : i32
    %c0_i32_0 = arith.constant 0 : i32
    %c0_i32_1 = arith.constant 0 : i32
    return %c0_i32, %c0_i32_0 : i32, i32
  }
  func.func @transform_2(%arg0: i32) -> (i32, i32) {
    %c0_i32 = arith.constant 0 : i32
    %c0_i32_0 = arith.constant 0 : i32
    %c0_i32_1 = arith.constant 0 : i32
    return %c0_i32, %c0_i32_0 : i32, i32
  }
  func.func @transform_3(%arg0: i32) -> (i32, i32) {
    %c0_i32 = arith.constant 0 : i32
    %c0_i32_0 = arith.constant 0 : i32
    %c0_i32_1 = arith.constant 0 : i32
    return %c0_i32, %c0_i32_0 : i32, i32
  }
  func.func @transform_4(%arg0: i32) -> (i32, i32) {
    %c0_i32 = arith.constant 0 : i32
    %c0_i32_0 = arith.constant 0 : i32
    %c0_i32_1 = arith.constant 0 : i32
    return %c0_i32, %c0_i32_0 : i32, i32
  }
  func.func @transform_5(%arg0: i32) -> (i32, i32) {
    %c0_i32 = arith.constant 0 : i32
    %c0_i32_0 = arith.constant 0 : i32
    %c0_i32_1 = arith.constant 0 : i32
    return %c0_i32, %c0_i32_0 : i32, i32
  }
  func.func @transform_6(%arg0: i32) -> (i32, i32) {
    %c0_i32 = arith.constant 0 : i32
    %c0_i32_0 = arith.constant 0 : i32
    %c0_i32_1 = arith.constant 0 : i32
    return %c0_i32, %c0_i32_0 : i32, i32
  }
  func.func @transform_7(%arg0: i32) -> (i32, i32) {
    %c0_i32 = arith.constant 0 : i32
    %c0_i32_0 = arith.constant 0 : i32
    %c0_i32_1 = arith.constant 0 : i32
    return %c0_i32, %c0_i32_0 : i32, i32
  }
  func.func @transform_8(%arg0: i32) -> (i32, i32) {
    %c0_i32 = arith.constant 0 : i32
    %c0_i32_0 = arith.constant 0 : i32
    %c0_i32_1 = arith.constant 0 : i32
    return %c0_i32, %c0_i32_0 : i32, i32
  }
  func.func @transform_9(%arg0: i32) -> (i32, i32) {
    %c0_i32 = arith.constant 0 : i32
    %c0_i32_0 = arith.constant 0 : i32
    %c0_i32_1 = arith.constant 0 : i32
    return %c0_i32, %c0_i32_0 : i32, i32
  }
}

</mosaic_0001>

<bundles_post_ra>
// kernel: lstm_flow_predictor.1
= control target key start
LH: loop header
LB: loop body
LE: loop exit
PB: predicated region body
PF: predicated region fallthrough
CT: control target
= control target key end

     0   :  { %s1925_s0 = inlined_call_operand.hbm [shape: f32[16,16], index: 0, kind: input, shape index: {}]   ;;  %s1926_s1 = inlined_call_operand.hbm [shape: f32[16,128], index: 1, kind: input, shape index: {}]   ;;  %s1927_s2 = inlined_call_operand.hbm [shape: f32[32,128], index: 2, kind: input, shape index: {}]   ;;  %s1928_s3 = inlined_call_operand.vmem [shape: f32[1,128], index: 3, kind: input, shape index: {}]   ;;  %s1929_s4 = inlined_call_operand.hbm [shape: f32[32,128], index: 4, kind: input, shape index: {}]   ;;  %s1930_s5 = inlined_call_operand.hbm [shape: f32[32,128], index: 5, kind: input, shape index: {}]   ;;  %s1931_s6 = inlined_call_operand.vmem [shape: f32[1,128], index: 6, kind: input, shape index: {}]   ;;  %s1932_s7 = inlined_call_operand.vmem [shape: f32[1,32], index: 7, kind: input, shape index: {}]   ;;  %s1933_s8 = inlined_call_operand.<no memory space> [shape: f32[1,1], index: 8, kind: input, shape index: {}]   ;;  %s1934_s9 = inlined_call_operand.vmem [shape: f32[2,1], index: 9, kind: output, shape index: {}]  }
   0x1   :  { %v14_v0 = vstv %s1933_s8 }
   0x2   :  { %15 = vst [vmem:[#allocation3] sm:$0x1] %v14_v0 }
   0x3   :  { %16 = vsyncpa [#allocation5], 0 }
   0x4   :  { %17 = vsyncpa [#allocation7], 0 }
   0x5   :  { %18 = vsyncpa [#allocation10], 0  ;;  %s36_s13 = sshll.u32 %s1926_s1, 4  ;;  %s1560_s14 = smov [#allocation6]   ;;  %s37_s13 = int_to_ptr.hbm [resolvable:$true] %s36_s13 }
   0x6   :  { %s38_s15 = sshll.u32 %s1560_s14, 4  ;;  %s64_s18 = sshll.u32 %s1929_s4, 4  ;;  %s39_s15 = int_to_ptr.vmem [resolvable:$true] %s38_s15  ;;  %s65_s18 = int_to_ptr.hbm [resolvable:$true] %s64_s18 }
   0x7   :  { %s1561_s19 = smov 128   ;;  %s1562_s20 = smov 8  }
   0x8   :  { %44 = dma.hbm_to_vmem [thread:$0]  %s37_s13, 256, %s39_s15, [#allocation7], %s1561_s19, %s1561_s19, %s1562_s20  }
   0x9   :  { %s1563_s8 = smov [#allocation9]   ;;  %s23_s24 = sshll.u32 %s1925_s0, 4  ;;  %s24_s24 = int_to_ptr.hbm [resolvable:$true] %s23_s24 }
   0xa   :  { %s66_s21 = sshll.u32 %s1563_s8, 4  ;;  %s49_s26 = sshll.u32 %s1927_s2, 4  ;;  %s67_s21 = int_to_ptr.vmem [resolvable:$true] %s66_s21  ;;  %s50_s26 = int_to_ptr.hbm [resolvable:$true] %s49_s26 }
   0xb   :  { %72 = dma.hbm_to_vmem [thread:$0]  %s65_s18, 512, %s67_s21, [#allocation10], %s1561_s19, %s1561_s19, %s1562_s20  }
   0xc   :  { %s1564_s27 = smov [#allocation4]   ;;  %s1565_s4 = smov [#allocation8]  }
   0xd   :  { %s25_s28 = sshll.u32 %s1564_s27, 4  ;;  %s51_s29 = sshll.u32 %s1565_s4, 4  ;;  %s26_s28 = int_to_ptr.vmem [resolvable:$true] %s25_s28  ;;  %s52_s29 = int_to_ptr.vmem [resolvable:$true] %s51_s29 }
   0xe   :  { %31 = dma.hbm_to_vmem [thread:$0]  %s24_s24, 256, %s26_s28, [#allocation5], %s1561_s19, %s1561_s19, %s1562_s20  }
   0xf   :  { %s77_s11 = sshll.u32 %s1930_s5, 4  ;;  %s1566_s0 = smov [#allocation11]   ;;  %s78_s11 = int_to_ptr.hbm [resolvable:$true] %s77_s11 }
  0x10   :  { %57 = dma.hbm_to_vmem [thread:$0]  %s50_s26, 512, %s52_s29, [#allocation7], %s1561_s19, %s1561_s19, %s1562_s20  }
  0x11   :  { %s79_s12 = sshll.u32 %s1566_s0, 4  ;;  %s80_s12 = int_to_ptr.vmem [resolvable:$true] %s79_s12 }
  0x12   :  { %85 = dma.hbm_to_vmem [thread:$0]  %s78_s11, 512, %s80_s12, [#allocation10], %s1561_s19, %s1561_s19, %s1562_s20  }
  0x13   :  { %1554 = dma.done.wait [#allocation5], 256  }
  0x14   :  { %1555 = vsyncadd [#allocation5], 4294967040 }
  0x15   :  { %1556 = dma.done.wait [#allocation7], 768  }
  0x16   :  { %1557 = vsyncadd [#allocation7], 4294966528 }
  0x17   :  { %1558 = dma.done.wait [#allocation10], 1024  }
  0x18   :  { %1559 = vsyncadd [#allocation10], 4294966272  ;;  %v1567_v1 = vmov 0.0   ;;  %v128_v2 = vld [vmem:[#allocation6 + $0x8] sm:$0xff]  ;;  %v127_v3 = vld [vmem:[#allocation6] sm:$0xff]  ;;  %vm133_vm0 = vcmask 130048  }
  0x19   :  { %163 = vst [vmem:[#allocation2] sm:$0xff] %v1567_v1  ;;  %154 = vmatpush.msra.mxu0 %v128_v2  ;;  %v125_v4 = vld [vmem:[#allocation4] sm:$0xff]  ;;  %v1639_v5 = vld [vmem:[#allocation8 + $0x18] sm:$0xff]  ;;  %v1641_v6 = vld [vmem:[#allocation8 + $0x10] sm:$0xff]  ;;  %s1569_s13 = smov 32   ;;  %vm188_vm5 = vcmask 261120  }
  0x1a   :  { %164 = vst [vmem:[#allocation2 + $0x8] sm:$0xff] %v1567_v1  ;;  %204 = vmatpush.msra.mxu1 %v1639_v5  ;;  %334 = vmatpush.msra.mxu3 %v1639_v5  ;;  %v1645_v7 = vld [vmem:[#allocation8 + $0x8] sm:$0xff]  ;;  %v1649_v8 = vld [vmem:[#allocation8] sm:$0xff]  ;;  %v1301_v10 = vld [vmem:[%s1928_s3] ss:$0 sm:$0xff]  ;;  %s1568_s3 = smov 64  }
  0x1b   :  { %165 = vst [vmem:[#allocation2 + $0x10] sm:$0xff] %v1567_v1  ;;  %155 = vmatpush.msra.mxu0 %v127_v3  ;;  %v126_v9 = vld [vmem:[#allocation4 + $0x8] sm:$0xff]  ;;  %v1674_v38 = vld [vmem:[#allocation11 + $0x18] sm:$0xff]  ;;  %v1676_v39 = vld [vmem:[#allocation11 + $0x10] sm:$0xff]  ;;  %vm258_vm6 = vcmask 523264   ;;  %s1570_s20 = smov 96  }
  0x1c   :  { %166 = vst [vmem:[#allocation2 + $0x18] sm:$0xff] %v1567_v1  ;;  %1257 = vmatmul.msk.f32.vlgmr.msra.gmra.mxu0 %vm133_vm0, %v125_v4  ;;  %205 = vmatpush.msra.mxu1 %v1641_v6  ;;  %v1680_v40 = vld [vmem:[#allocation11 + $0x8] sm:$0xff]  ;;  %v1685_v41 = vld [vmem:[#allocation11] sm:$0xff]  ;;  %v1690_v42 = vld [vmem:[#allocation9 + $0x18] sm:$0xff] }
  0x1d   :  { %167 = vst [vmem:[#allocation2 + $0x20] sm:$0xff] %v1567_v1  ;;  %335 = vmatpush.msra.mxu3 %v1641_v6  ;;  %270 = vmatpush.msra.mxu2 %v1674_v38  ;;  %v1695_v43 = vld [vmem:[#allocation9 + $0x10] sm:$0xff]  ;;  %v1700_v44 = vld [vmem:[#allocation9 + $0x8] sm:$0xff]  ;;  %v1710_v47 = vld [vmem:[#allocation9] sm:$0xff] }
  0x1e   :  { %168 = vst [vmem:[#allocation2 + $0x28] sm:$0xff] %v1567_v1  ;;  %206 = vmatpush.msra.mxu1 %v1645_v7  ;;  %400 = vmatpush.msrb.mxu0 %v1674_v38  ;;  %v1745_v50 = vld [vmem:[%s1931_s6] ss:$0 sm:$0xff] }
  0x1f   :  { %169 = vst [vmem:[#allocation2 + $0x30] sm:$0xff] %v1567_v1  ;;  %336 = vmatpush.msra.mxu3 %v1645_v7  ;;  %271 = vmatpush.msra.mxu2 %v1676_v39 }
  0x20   :  { %170 = vst [vmem:[#allocation2 + $0x38] sm:$0xff] %v1567_v1  ;;  %207 = vmatpush.msra.mxu1 %v1649_v8  ;;  %401 = vmatpush.msrb.mxu0 %v1676_v39 }
  0x21   :  { %208 = vmatmul.f32.vlgmr.msra.gmra.mxu1 %v1567_v1  ;;  %337 = vmatpush.msra.mxu3 %v1649_v8 }
  0x22   :  { %464 = vmatpush.msrb.mxu1 %v1639_v5  ;;  %272 = vmatpush.msra.mxu2 %v1680_v40 }
  0x23   :  { %530 = vmatpush.msrb.mxu3 %v1674_v38  ;;  %402 = vmatpush.msrb.mxu0 %v1680_v40 }
  0x24   :  { %1258 = vmatmul.msk.f32.gmra.mxu0 %vm133_vm0, %v126_v9  ;;  %465 = vmatpush.msrb.mxu1 %v1641_v6 }
  0x25   :  { %531 = vmatpush.msrb.mxu3 %v1676_v39  ;;  %273 = vmatpush.msra.mxu2 %v1685_v41 }
  0x26   :  { %466 = vmatpush.msrb.mxu1 %v1645_v7  ;;  %403 = vmatpush.msrb.mxu0 %v1685_v41 }
  0x27   :  { %532 = vmatpush.msrb.mxu3 %v1680_v40  ;;  %274 = vmatpush.msra.mxu2 %v1690_v42 }
  0x28   :  { %467 = vmatpush.msrb.mxu1 %v1649_v8  ;;  %404 = vmatpush.msrb.mxu0 %v1690_v42 }
  0x29   :  { %533 = vmatpush.msrb.mxu3 %v1685_v41  ;;  %275 = vmatpush.msra.mxu2 %v1695_v43 }
  0x2a   :  { %594 = vmatpush.msra.mxu1 %v1639_v5  ;;  %405 = vmatpush.msrb.mxu0 %v1695_v43 }
  0x2b   :  { %534 = vmatpush.msrb.mxu3 %v1690_v42  ;;  %276 = vmatpush.msra.mxu2 %v1700_v44 }
  0x2c   :  { %595 = vmatpush.msra.mxu1 %v1641_v6  ;;  %406 = vmatpush.msrb.mxu0 %v1700_v44 }
  0x2d   :  { %535 = vmatpush.msrb.mxu3 %v1695_v43  ;;  %277 = vmatpush.msra.mxu2 %v1710_v47 }
  0x2e   :  { %596 = vmatpush.msra.mxu1 %v1645_v7  ;;  %407 = vmatpush.msrb.mxu0 %v1710_v47 }
  0x2f   :  { %536 = vmatpush.msrb.mxu3 %v1700_v44  ;;  %660 = vmatpush.msrb.mxu2 %v1674_v38 }
  0x30   :  { %597 = vmatpush.msra.mxu1 %v1649_v8  ;;  %724 = vmatpush.msra.mxu0 %v1639_v5 }
  0x31   :  { %537 = vmatpush.msrb.mxu3 %v1710_v47  ;;  %661 = vmatpush.msrb.mxu2 %v1676_v39 }
  0x32   :  { %725 = vmatpush.msra.mxu0 %v1641_v6 }
  0x33   :  { %662 = vmatpush.msrb.mxu2 %v1680_v40 }
  0x34   :  { %726 = vmatpush.msra.mxu0 %v1645_v7 }
  0x35   :  { %663 = vmatpush.msrb.mxu2 %v1685_v41 }
  0x36   :  { %727 = vmatpush.msra.mxu0 %v1649_v8 }
  0x37   :  { %664 = vmatpush.msrb.mxu2 %v1690_v42 }
  0x39   :  { %665 = vmatpush.msrb.mxu2 %v1695_v43 }
  0x3b   :  { %666 = vmatpush.msrb.mxu2 %v1700_v44 }
  0x3d   :  { %667 = vmatpush.msrb.mxu2 %v1710_v47 }
  0x99   :  { %v157_v11 = vpop.f32.mrf.mxu0 }
  0x9a   :  { %v158_v12 = vadd.f32 %v1301_v10, %v157_v11 }
  0x9c   :  { %171 = vst [vmem:[#allocation2] sm:$0x1] %v158_v12 }
  0x9d   :  { %173 = vst [vmem:[#allocation2 + $0x7] sm:$0x2] %v158_v12 }
  0x9e   :  { %175 = vst [vmem:[#allocation2 + $0xe] sm:$0x4] %v158_v12  ;;  %v209_v15 = vpop.f32.mrf.mxu1 }
  0x9f   :  { %177 = vst [vmem:[#allocation2 + $0x15] sm:$0x8] %v158_v12 }
  0xa0   :  { %179 = vst [vmem:[#allocation2 + $0x1c] sm:$0x10] %v158_v12 }
  0xa1   :  { %181 = vst [vmem:[#allocation2 + $0x23] sm:$0x20] %v158_v12  ;;  %v160_v13 = vpop.f32.mrf.mxu0 }
  0xa2   :  { %183 = vst [vmem:[#allocation2 + $0x2a] sm:$0x40] %v158_v12  ;;  %v161_v14 = vadd.f32 %v1301_v10, %v160_v13 }
  0xa3   :  { %185 = vst [vmem:[#allocation2 + $0x31] sm:$0x80] %v158_v12 }
  0xa4   :  { %172 = vst [vmem:[#allocation2 + $0x1] sm:$0x1] %v161_v14 }
  0xa5   :  { %174 = vst [vmem:[#allocation2 + $0x8] sm:$0x2] %v161_v14 }
  0xa6   :  { %176 = vst [vmem:[#allocation2 + $0xf] sm:$0x4] %v161_v14 }
  0xa7   :  { %178 = vst [vmem:[#allocation2 + $0x16] sm:$0x8] %v161_v14 }
  0xa8   :  { %180 = vst [vmem:[#allocation2 + $0x1d] sm:$0x10] %v161_v14 }
  0xa9   :  { %182 = vst [vmem:[#allocation2 + $0x24] sm:$0x20] %v161_v14 }
  0xaa   :  { %184 = vst [vmem:[#allocation2 + $0x2b] sm:$0x40] %v161_v14 }
  0xab   :  { %186 = vst [vmem:[#allocation2 + $0x32] sm:$0x80] %v161_v14  ;;  %v187_v16 = vld [vmem:[#allocation2] sm:$0xff] }
  0xac   :  { %v212_v17 = vadd.f32 %v209_v15, %v187_v16  ;;  %v319_v54 = vld [vmem:[#allocation2 + $0x8] sm:$0xff] }
  0xae   :  { %1305 = vtanh.f32 %v212_v17  ;;  %v1259_v19 = vmul.f32 -1.442695, %v212_v17 }
  0xb0   :  { %1307 = vpow2.f32 %v1259_v19 }
  0xb4   :  { %v1306_v18 = vpop.eup %1305 }
  0xb5   :  { %235 = vrot.lane.b32.xlu0 %v1306_v18, %s1568_s3 }
  0xb6   :  { %v1308_v20 = vpop.eup %1307 }
  0xb7   :  { %v216_v21 = vadd.f32 1.0, %v1308_v20 }
  0xb9   :  { %1309 = vrcp.f32 %v216_v21  ;;  %v228_v27 = vand.u32 2147483648, %v216_v21  ;;  %vm222_vm2 = vweird.f32 %v216_v21  ;;  %v226_v28 = vand.u32 2147483647, %v216_v21 }
  0xbb   :  { %v229_v30 = vor.u32 1.1754944e-38, %v228_v27  ;;  %vm227_vm4 = vcmp.eq.f32.partialorder %v226_v28, 8.507059e+37 }
  0xbf   :  { %v1310_v22 = vpop.eup %1309 }
  0xc0   :  { %v218_v23 = vmul.f32 %v1310_v22, %v216_v21  ;;  %vm223_vm1 = vweird.f32 %v1310_v22 }
  0xc1   :  { %vm224_vm3 = vmor %vm222_vm2, %vm223_vm1 }
  0xc2   :  { %v219_v24 = vsub.f32 1.0, %v218_v23 }
  0xc4   :  { %v220_v25 = vmul.f32 %v1310_v22, %v219_v24 }
  0xc6   :  { %v221_v26 = vadd.f32 %v1310_v22, %v220_v25 }
  0xc8   :  { %v225_v29 = vsel %vm224_vm3, %v1310_v22, %v221_v26 }
  0xc9   :  { %v230_v32 = vsel %vm227_vm4, %v229_v30, %v225_v29 }
  0xca   :  { %v233_v34 = vmul.f32 0.0, %v230_v32 }
 0x127   :  { %v236_v31 = vpop.permute.xlu0 %235 }
 0x128   :  { %v238_v33 = vmul.f32 %v236_v31, %v230_v32 }
 0x12a   :  { %240 = vrot.lane.b32.xlu0 %v238_v33, %s1569_s13 }
 0x19c   :  { %v241_v35 = vpop.permute.xlu0 %240 }
 0x19d   :  { %v1670_v36 = vadd.f32 %v241_v35, %v233_v34 }
 0x19f   :  { %1311 = vtanh.f32 %v1670_v36 }
 0x1a5   :  { %v1312_v37 = vpop.eup %1311 }
 0x1a6   :  { %246 = vrot.lane.b32.xlu1 %v1312_v37, %s1568_s3 }
 0x218   :  { %v247_v45 = vpop.permute.xlu1 %246 }
 0x219   :  { %v249_v46 = vmul.f32 %v247_v45, %v230_v32 }
 0x21b   :  { %251 = vrot.lane.b32.xlu1 %v249_v46, %s1569_s13 }
 0x28d   :  { %v252_v48 = vpop.permute.xlu1 %251 }
 0x28e   :  { %1262 = vmatmul.msk.f32.vlgmr.msra.gmra.mxu3 %vm188_vm5, %v252_v48  ;;  %v254_v49 = vsel %vm188_vm5, %v252_v48, 0.0 }
 0x28f   :  { %1260 = vmatmul.msk.f32.vlgmr.msra.gmra.mxu2 %vm258_vm6, %v254_v49  ;;  %854 = vmatpush.msra.mxu3 %v1639_v5 }
 0x290   :  { %1180 = vmatpush.msra.mxu2 %v1674_v38 }
 0x291   :  { %855 = vmatpush.msra.mxu3 %v1641_v6 }
 0x292   :  { %1181 = vmatpush.msra.mxu2 %v1676_v39 }
 0x293   :  { %856 = vmatpush.msra.mxu3 %v1645_v7 }
 0x294   :  { %1182 = vmatpush.msra.mxu2 %v1680_v40 }
 0x295   :  { %857 = vmatpush.msra.mxu3 %v1649_v8 }
 0x296   :  { %1183 = vmatpush.msra.mxu2 %v1685_v41 }
 0x298   :  { %1184 = vmatpush.msra.mxu2 %v1690_v42 }
 0x29a   :  { %1185 = vmatpush.msra.mxu2 %v1695_v43 }
 0x29c   :  { %1186 = vmatpush.msra.mxu2 %v1700_v44 }
 0x29e   :  { %1187 = vmatpush.msra.mxu2 %v1710_v47 }
 0x311   :  { %v339_v53 = vpop.f32.mrf.mxu3 }
 0x312   :  { %v279_v51 = vpop.f32.mrf.mxu2  ;;  %v342_v55 = vadd.f32 %v339_v53, %v319_v54 }
 0x313   :  { %v280_v52 = vadd.f32 %v1745_v50, %v279_v51 }
 0x314   :  { %v1263_v59 = vmul.f32 -1.442695, %v342_v55 }
 0x315   :  { %1313 = vtanh.f32 %v280_v52  ;;  %v1261_v58 = vmul.f32 -1.442695, %v280_v52  ;;  %v449_v52 = vld [vmem:[#allocation2 + $0x10] sm:$0xff] }
 0x316   :  { %1315 = vtanh.f32 %v342_v55 }
 0x317   :  { %1317 = vpow2.f32 %v1261_v58 }
 0x318   :  { %1319 = vpow2.f32 %v1263_v59 }
 0x31b   :  { %v1314_v56 = vpop.eup %1313 }
 0x31c   :  { %304 = vrot.lane.b32.xlu2 %v1314_v56, %s1568_s3  ;;  %v1316_v57 = vpop.eup %1315 }
 0x31d   :  { %v1318_v60 = vpop.eup %1317 }
 0x31e   :  { %v285_v61 = vadd.f32 1.0, %v1318_v60  ;;  %v1320_v62 = vpop.eup %1319 }
 0x31f   :  { %v346_v63 = vadd.f32 1.0, %v1320_v62 }
 0x320   :  { %1321 = vrcp.f32 %v285_v61  ;;  %v297_v12 = vand.u32 2147483648, %v285_v61  ;;  %vm291_vm8 = vweird.f32 %v285_v61  ;;  %v295_v13 = vand.u32 2147483647, %v285_v61 }
 0x321   :  { %1323 = vrcp.f32 %v346_v63  ;;  %v358_v21 = vand.u32 2147483648, %v346_v63  ;;  %vm352_vm12 = vweird.f32 %v346_v63  ;;  %v356_v22 = vand.u32 2147483647, %v346_v63 }
 0x322   :  { %v298_v16 = vor.u32 1.1754944e-38, %v297_v12  ;;  %vm296_vm10 = vcmp.eq.f32.partialorder %v295_v13, 8.507059e+37 }
 0x323   :  { %v359_v24 = vor.u32 1.1754944e-38, %v358_v21  ;;  %vm357_vm14 = vcmp.eq.f32.partialorder %v356_v22, 8.507059e+37 }
 0x324   :  { %365 = vrot.lane.b32.xlu2 %v1316_v57, %s1568_s3 }
 0x326   :  { %v1322_v0 = vpop.eup %1321 }
 0x327   :  { %v287_v1 = vmul.f32 %v1322_v0, %v285_v61  ;;  %v1324_v3 = vpop.eup %1323  ;;  %vm292_vm7 = vweird.f32 %v1322_v0 }
 0x328   :  { %v348_v9 = vmul.f32 %v1324_v3, %v346_v63  ;;  %vm293_vm9 = vmor %vm291_vm8, %vm292_vm7  ;;  %vm353_vm11 = vweird.f32 %v1324_v3 }
 0x329   :  { %v288_v2 = vsub.f32 1.0, %v287_v1  ;;  %vm354_vm13 = vmor %vm352_vm12, %vm353_vm11 }
 0x32a   :  { %v349_v11 = vsub.f32 1.0, %v348_v9 }
 0x32b   :  { %v289_v4 = vmul.f32 %v1322_v0, %v288_v2 }
 0x32c   :  { %v350_v15 = vmul.f32 %v1324_v3, %v349_v11 }
 0x32d   :  { %v290_v10 = vadd.f32 %v1322_v0, %v289_v4 }
 0x32e   :  { %v351_v20 = vadd.f32 %v1324_v3, %v350_v15 }
 0x32f   :  { %v294_v14 = vsel %vm293_vm9, %v1322_v0, %v290_v10 }
 0x330   :  { %v299_v18 = vsel %vm296_vm10, %v298_v16, %v294_v14  ;;  %v355_v23 = vsel %vm354_vm13, %v1324_v3, %v351_v20 }
 0x331   :  { %v360_v25 = vsel %vm357_vm14, %v359_v24, %v355_v23  ;;  %v302_v28 = vmul.f32 0.0, %v299_v18 }
 0x332   :  { %v363_v31 = vmul.f32 %v360_v25, %v1670_v36 }
 0x376   :  { %v305_v17 = vpop.permute.xlu2 %304 }
 0x377   :  { %v307_v19 = vmul.f32 %v305_v17, %v299_v18 }
 0x379   :  { %309 = vrot.lane.b32.xlu0 %v307_v19, %s1569_s13 }
 0x37e   :  { %v366_v26 = vpop.permute.xlu2 %365 }
 0x37f   :  { %v368_v27 = vmul.f32 %v366_v26, %v360_v25 }
 0x381   :  { %370 = vrot.lane.b32.xlu1 %v368_v27, %s1569_s13 }
 0x3eb   :  { %v310_v29 = vpop.permute.xlu0 %309 }
 0x3ec   :  { %v1752_v30 = vadd.f32 %v310_v29, %v302_v28 }
 0x3ee   :  { %1325 = vtanh.f32 %v1752_v30 }
 0x3f3   :  { %v371_v32 = vpop.permute.xlu1 %370 }
 0x3f4   :  { %v1326_v33 = vpop.eup %1325  ;;  %v1756_v34 = vadd.f32 %v371_v32, %v363_v31 }
 0x3f5   :  { %315 = vrot.lane.b32.xlu2 %v1326_v33, %s1568_s3 }
 0x3f6   :  { %1327 = vtanh.f32 %v1756_v34 }
 0x3fc   :  { %v1328_v35 = vpop.eup %1327 }
 0x3fd   :  { %376 = vrot.lane.b32.xlu0 %v1328_v35, %s1568_s3 }
 0x44f   :  { %v316_v37 = vpop.permute.xlu2 %315 }
 0x450   :  { %v318_v45 = vmul.f32 %v316_v37, %v299_v18 }
 0x452   :  { %385 = vrot.lane.b32.xlu2 %v318_v45, %s1568_s3 }
 0x46f   :  { %v377_v46 = vpop.permute.xlu0 %376 }
 0x470   :  { %v379_v48 = vmul.f32 %v377_v46, %v360_v25 }
 0x472   :  { %381 = vrot.lane.b32.xlu1 %v379_v48, %s1569_s13 }
 0x4ac   :  { %v386_v36 = vpop.permute.xlu2 %385 }
 0x4e4   :  { %v382_v49 = vpop.permute.xlu1 %381 }
 0x4e5   :  { %v388_v51 = vsel %vm188_vm5, %v382_v49, %v386_v36  ;;  %1266 = vmatmul.msk.f32.vlgmr.msrb.gmra.mxu1 %vm188_vm5, %v382_v49 }
 0x4e6   :  { %1264 = vmatmul.msk.f32.vlgmr.msrb.gmra.mxu0 %vm258_vm6, %v388_v51  ;;  %790 = vmatpush.msrb.mxu1 %v1674_v38 }
 0x4e7   :  { %920 = vmatpush.msrb.mxu0 %v1674_v38 }
 0x4e8   :  { %791 = vmatpush.msrb.mxu1 %v1676_v39 }
 0x4e9   :  { %921 = vmatpush.msrb.mxu0 %v1676_v39 }
 0x4ea   :  { %792 = vmatpush.msrb.mxu1 %v1680_v40 }
 0x4eb   :  { %922 = vmatpush.msrb.mxu0 %v1680_v40 }
 0x4ec   :  { %793 = vmatpush.msrb.mxu1 %v1685_v41 }
 0x4ed   :  { %923 = vmatpush.msrb.mxu0 %v1685_v41 }
 0x4ee   :  { %794 = vmatpush.msrb.mxu1 %v1690_v42 }
 0x4ef   :  { %924 = vmatpush.msrb.mxu0 %v1690_v42 }
 0x4f0   :  { %795 = vmatpush.msrb.mxu1 %v1695_v43 }
 0x4f1   :  { %925 = vmatpush.msrb.mxu0 %v1695_v43 }
 0x4f2   :  { %796 = vmatpush.msrb.mxu1 %v1700_v44 }
 0x4f3   :  { %926 = vmatpush.msrb.mxu0 %v1700_v44 }
 0x4f4   :  { %797 = vmatpush.msrb.mxu1 %v1710_v47 }
 0x4f5   :  { %927 = vmatpush.msrb.mxu0 %v1710_v47 }
 0x562   :  { %v469_v53 = vpop.f32.mrf.mxu1 }
 0x563   :  { %v472_v54 = vadd.f32 %v469_v53, %v449_v52  ;;  %v409_v55 = vpop.f32.mrf.mxu0  ;;  %v579_v53 = vld [vmem:[#allocation2 + $0x18] sm:$0xff] }
 0x564   :  { %v410_v56 = vadd.f32 %v1745_v50, %v409_v55 }
 0x565   :  { %1329 = vtanh.f32 %v472_v54  ;;  %v1267_v59 = vmul.f32 -1.442695, %v472_v54 }
 0x566   :  { %1331 = vtanh.f32 %v410_v56  ;;  %v1265_v60 = vmul.f32 -1.442695, %v410_v56 }
 0x567   :  { %1333 = vpow2.f32 %v1267_v59 }
 0x568   :  { %1335 = vpow2.f32 %v1265_v60 }
 0x56b   :  { %v1330_v57 = vpop.eup %1329 }
 0x56c   :  { %v1332_v58 = vpop.eup %1331  ;;  %495 = vrot.lane.b32.xlu1 %v1330_v57, %s1568_s3 }
 0x56d   :  { %434 = vrot.lane.b32.xlu0 %v1332_v58, %s1568_s3  ;;  %v1334_v61 = vpop.eup %1333 }
 0x56e   :  { %v1336_v62 = vpop.eup %1335  ;;  %v476_v63 = vadd.f32 1.0, %v1334_v61 }
 0x56f   :  { %v415_v0 = vadd.f32 1.0, %v1336_v62 }
 0x570   :  { %1337 = vrcp.f32 %v476_v63  ;;  %v488_v14 = vand.u32 2147483648, %v476_v63  ;;  %vm482_vm1 = vweird.f32 %v476_v63  ;;  %v486_v16 = vand.u32 2147483647, %v476_v63 }
 0x571   :  { %1339 = vrcp.f32 %v415_v0  ;;  %v427_v17 = vand.u32 2147483648, %v415_v0  ;;  %vm421_vm3 = vweird.f32 %v415_v0  ;;  %v425_v18 = vand.u32 2147483647, %v415_v0 }
 0x572   :  { %v489_v20 = vor.u32 1.1754944e-38, %v488_v14  ;;  %vm487_vm7 = vcmp.eq.f32.partialorder %v486_v16, 8.507059e+37 }
 0x573   :  { %v428_v22 = vor.u32 1.1754944e-38, %v427_v17  ;;  %vm426_vm8 = vcmp.eq.f32.partialorder %v425_v18, 8.507059e+37 }
 0x576   :  { %v1338_v1 = vpop.eup %1337 }
 0x577   :  { %v1340_v2 = vpop.eup %1339  ;;  %v478_v3 = vmul.f32 %v1338_v1, %v476_v63  ;;  %vm483_vm15 = vweird.f32 %v1338_v1 }
 0x578   :  { %v417_v4 = vmul.f32 %v1340_v2, %v415_v0  ;;  %vm422_vm0 = vweird.f32 %v1340_v2  ;;  %vm484_vm2 = vmor %vm482_vm1, %vm483_vm15 }
 0x579   :  { %v479_v9 = vsub.f32 1.0, %v478_v3  ;;  %vm423_vm4 = vmor %vm421_vm3, %vm422_vm0 }
 0x57a   :  { %v418_v10 = vsub.f32 1.0, %v417_v4 }
 0x57b   :  { %v480_v11 = vmul.f32 %v1338_v1, %v479_v9 }
 0x57c   :  { %v419_v12 = vmul.f32 %v1340_v2, %v418_v10 }
 0x57d   :  { %v481_v13 = vadd.f32 %v1338_v1, %v480_v11 }
 0x57e   :  { %v420_v15 = vadd.f32 %v1340_v2, %v419_v12 }
 0x57f   :  { %v485_v19 = vsel %vm484_vm2, %v1338_v1, %v481_v13 }
 0x580   :  { %v424_v21 = vsel %vm423_vm4, %v1340_v2, %v420_v15  ;;  %v490_v24 = vsel %vm487_vm7, %v489_v20, %v485_v19 }
 0x581   :  { %v429_v27 = vsel %vm426_vm8, %v428_v22, %v424_v21  ;;  %v493_v35 = vmul.f32 %v490_v24, %v1756_v34 }
 0x582   :  { %v432_v29 = vmul.f32 %v429_v27, %v1752_v30 }
 0x5de   :  { %v496_v23 = vpop.permute.xlu1 %495 }
 0x5df   :  { %v498_v25 = vmul.f32 %v496_v23, %v490_v24  ;;  %v435_v26 = vpop.permute.xlu0 %434 }
 0x5e0   :  { %v437_v28 = vmul.f32 %v435_v26, %v429_v27 }
 0x5e1   :  { %500 = vrot.lane.b32.xlu0 %v498_v25, %s1569_s13 }
 0x5e2   :  { %439 = vrot.lane.b32.xlu2 %v437_v28, %s1569_s13 }
 0x63c   :  { %v440_v31 = vpop.permute.xlu2 %439 }
 0x63d   :  { %v1788_v32 = vadd.f32 %v440_v31, %v432_v29 }
 0x63f   :  { %1341 = vtanh.f32 %v1788_v32 }
 0x645   :  { %v1342_v33 = vpop.eup %1341 }
 0x646   :  { %445 = vrot.lane.b32.xlu1 %v1342_v33, %s1568_s3 }
 0x653   :  { %v501_v37 = vpop.permute.xlu0 %500 }
 0x654   :  { %v1793_v45 = vadd.f32 %v501_v37, %v493_v35 }
 0x656   :  { %1343 = vtanh.f32 %v1793_v45 }
 0x65c   :  { %v1344_v46 = vpop.eup %1343 }
 0x65d   :  { %506 = vrot.lane.b32.xlu2 %v1344_v46, %s1568_s3 }
 0x6b7   :  { %v507_v48 = vpop.permute.xlu2 %506 }
 0x6b8   :  { %v509_v30 = vmul.f32 %v507_v48, %v490_v24  ;;  %v446_v36 = vpop.permute.xlu1 %445  ;;  %v709_v48 = vld [vmem:[#allocation2 + $0x20] sm:$0xff] }
 0x6b9   :  { %v448_v49 = vmul.f32 %v446_v36, %v429_v27 }
 0x6ba   :  { %511 = vrot.lane.b32.xlu0 %v509_v30, %s1569_s13 }
 0x6bb   :  { %515 = vrot.lane.b32.xlu1 %v448_v49, %s1568_s3 }
 0x72c   :  { %v512_v51 = vpop.permute.xlu0 %511 }
 0x72d   :  { %1270 = vmatmul.msk.f32.vlgmr.msra.gmra.mxu1 %vm188_vm5, %v512_v51  ;;  %v516_v34 = vpop.permute.xlu1 %515 }
 0x72e   :  { %v518_v52 = vsel %vm188_vm5, %v512_v51, %v516_v34  ;;  %1114 = vmatpush.msra.mxu1 %v1639_v5 }
 0x72f   :  { %1268 = vmatmul.msk.f32.vlgmr.msrb.gmra.mxu3 %vm258_vm6, %v518_v52 }
 0x730   :  { %1115 = vmatpush.msra.mxu1 %v1641_v6  ;;  %1050 = vmatpush.msrb.mxu3 %v1674_v38 }
 0x732   :  { %1116 = vmatpush.msra.mxu1 %v1645_v7  ;;  %1051 = vmatpush.msrb.mxu3 %v1676_v39 }
 0x734   :  { %1117 = vmatpush.msra.mxu1 %v1649_v8  ;;  %1052 = vmatpush.msrb.mxu3 %v1680_v40 }
 0x736   :  { %1053 = vmatpush.msrb.mxu3 %v1685_v41 }
 0x738   :  { %1054 = vmatpush.msrb.mxu3 %v1690_v42 }
 0x73a   :  { %1055 = vmatpush.msrb.mxu3 %v1695_v43 }
 0x73c   :  { %1056 = vmatpush.msrb.mxu3 %v1700_v44 }
 0x73e   :  { %1057 = vmatpush.msrb.mxu3 %v1710_v47 }
 0x7aa   :  { %v599_v38 = vpop.f32.mrf.mxu1 }
 0x7ab   :  { %v602_v54 = vadd.f32 %v599_v38, %v579_v53 }
 0x7ad   :  { %1345 = vtanh.f32 %v602_v54  ;;  %v1271_v44 = vmul.f32 -1.442695, %v602_v54 }
 0x7b2   :  { %v539_v55 = vpop.f32.mrf.mxu3 }
 0x7b3   :  { %v1346_v39 = vpop.eup %1345  ;;  %v540_v56 = vadd.f32 %v1745_v50, %v539_v55 }
 0x7b4   :  { %625 = vrot.lane.b32.xlu0 %v1346_v39, %s1568_s3 }
 0x7b5   :  { %1347 = vtanh.f32 %v540_v56  ;;  %v1269_v41 = vmul.f32 -1.442695, %v540_v56 }
 0x7b7   :  { %1349 = vpow2.f32 %v1269_v41 }
 0x7bb   :  { %v1348_v40 = vpop.eup %1347 }
 0x7bc   :  { %564 = vrot.lane.b32.xlu2 %v1348_v40, %s1568_s3 }
 0x7bd   :  { %v1350_v42 = vpop.eup %1349 }
 0x7be   :  { %v545_v43 = vadd.f32 1.0, %v1350_v42 }
 0x7c0   :  { %1351 = vrcp.f32 %v545_v43  ;;  %v557_v0 = vand.u32 2147483648, %v545_v43  ;;  %vm551_vm10 = vweird.f32 %v545_v43  ;;  %v555_v1 = vand.u32 2147483647, %v545_v43 }
 0x7c1   :  { %1353 = vpow2.f32 %v1271_v44 }
 0x7c2   :  { %v558_v4 = vor.u32 1.1754944e-38, %v557_v0  ;;  %vm556_vm12 = vcmp.eq.f32.partialorder %v555_v1, 8.507059e+37 }
 0x7c6   :  { %v1352_v47 = vpop.eup %1351 }
 0x7c7   :  { %v1354_v57 = vpop.eup %1353  ;;  %v547_v58 = vmul.f32 %v1352_v47, %v545_v43  ;;  %vm552_vm9 = vweird.f32 %v1352_v47 }
 0x7c8   :  { %v606_v59 = vadd.f32 1.0, %v1354_v57  ;;  %vm553_vm11 = vmor %vm551_vm10, %vm552_vm9 }
 0x7c9   :  { %v548_v60 = vsub.f32 1.0, %v547_v58 }
 0x7ca   :  { %1355 = vrcp.f32 %v606_v59  ;;  %v618_v15 = vand.u32 2147483648, %v606_v59  ;;  %vm612_vm14 = vweird.f32 %v606_v59  ;;  %v616_v16 = vand.u32 2147483647, %v606_v59 }
 0x7cb   :  { %v549_v61 = vmul.f32 %v1352_v47, %v548_v60 }
 0x7cc   :  { %v619_v18 = vor.u32 1.1754944e-38, %v618_v15  ;;  %vm617_vm0 = vcmp.eq.f32.partialorder %v616_v16, 8.507059e+37 }
 0x7cd   :  { %v550_v62 = vadd.f32 %v1352_v47, %v549_v61 }
 0x7cf   :  { %v554_v2 = vsel %vm553_vm11, %v1352_v47, %v550_v62 }
 0x7d0   :  { %v1356_v63 = vpop.eup %1355  ;;  %v559_v10 = vsel %vm556_vm12, %v558_v4, %v554_v2 }
 0x7d1   :  { %v608_v3 = vmul.f32 %v1356_v63, %v606_v59  ;;  %vm613_vm13 = vweird.f32 %v1356_v63  ;;  %v562_v25 = vmul.f32 %v559_v10, %v1788_v32 }
 0x7d2   :  { %vm614_vm15 = vmor %vm612_vm14, %vm613_vm13 }
 0x7d3   :  { %v609_v12 = vsub.f32 1.0, %v608_v3 }
 0x7d5   :  { %v610_v13 = vmul.f32 %v1356_v63, %v609_v12 }
 0x7d7   :  { %v611_v14 = vadd.f32 %v1356_v63, %v610_v13 }
 0x7d9   :  { %v615_v17 = vsel %vm614_vm15, %v1356_v63, %v611_v14 }
 0x7da   :  { %v620_v20 = vsel %vm617_vm0, %v619_v18, %v615_v17 }
 0x7db   :  { %v623_v22 = vmul.f32 %v620_v20, %v1793_v45 }
 0x816   :  { %v565_v9 = vpop.permute.xlu2 %564 }
 0x817   :  { %v567_v11 = vmul.f32 %v565_v9, %v559_v10 }
 0x819   :  { %569 = vrot.lane.b32.xlu1 %v567_v11, %s1569_s13 }
 0x826   :  { %v626_v19 = vpop.permute.xlu0 %625 }
 0x827   :  { %v628_v21 = vmul.f32 %v626_v19, %v620_v20 }
 0x829   :  { %630 = vrot.lane.b32.xlu2 %v628_v21, %s1569_s13 }
 0x883   :  { %v631_v23 = vpop.permute.xlu2 %630 }
 0x884   :  { %v1820_v24 = vadd.f32 %v631_v23, %v623_v22 }
 0x886   :  { %1357 = vtanh.f32 %v1820_v24 }
 0x88b   :  { %v570_v26 = vpop.permute.xlu1 %569 }
 0x88c   :  { %v1358_v27 = vpop.eup %1357  ;;  %v1824_v28 = vadd.f32 %v570_v26, %v562_v25  ;;  %v839_v26 = vld [vmem:[#allocation2 + $0x28] sm:$0xff] }
 0x88d   :  { %636 = vrot.lane.b32.xlu1 %v1358_v27, %s1568_s3 }
 0x88e   :  { %1359 = vtanh.f32 %v1824_v28 }
 0x894   :  { %v1360_v29 = vpop.eup %1359 }
 0x895   :  { %575 = vrot.lane.b32.xlu0 %v1360_v29, %s1568_s3 }
 0x8ff   :  { %v637_v31 = vpop.permute.xlu1 %636 }
 0x900   :  { %v639_v33 = vmul.f32 %v637_v31, %v620_v20 }
 0x902   :  { %641 = vrot.lane.b32.xlu2 %v639_v33, %s1569_s13 }
 0x907   :  { %v576_v35 = vpop.permute.xlu0 %575 }
 0x908   :  { %v578_v37 = vmul.f32 %v576_v35, %v559_v10 }
 0x90a   :  { %645 = vrot.lane.b32.xlu0 %v578_v37, %s1568_s3 }
 0x95c   :  { %v642_v32 = vpop.permute.xlu2 %641 }
 0x95d   :  { %1274 = vmatmul.msk.f32.vlgmr.msra.gmra.mxu0 %vm188_vm5, %v642_v32 }
 0x95e   :  { %984 = vmatpush.msra.mxu0 %v1639_v5 }
 0x960   :  { %985 = vmatpush.msra.mxu0 %v1641_v6 }
 0x962   :  { %986 = vmatpush.msra.mxu0 %v1645_v7 }
 0x964   :  { %987 = vmatpush.msra.mxu0 %v1649_v8 }
 0x97c   :  { %v646_v45 = vpop.permute.xlu0 %645 }
 0x97d   :  { %v648_v46 = vsel %vm188_vm5, %v642_v32, %v646_v45 }
 0x97e   :  { %1272 = vmatmul.msk.f32.vlgmr.msrb.gmra.mxu2 %vm258_vm6, %v648_v46 }
 0x9da   :  { %v729_v30 = vpop.f32.mrf.mxu0 }
 0x9db   :  { %v732_v36 = vadd.f32 %v729_v30, %v709_v48 }
 0x9dd   :  { %1361 = vtanh.f32 %v732_v36  ;;  %v1275_v7 = vmul.f32 -1.442695, %v732_v36 }
 0x9e3   :  { %v1362_v49 = vpop.eup %1361 }
 0x9e4   :  { %755 = vrot.lane.b32.xlu1 %v1362_v49, %s1568_s3 }
 0xa01   :  { %v669_v51 = vpop.f32.mrf.mxu2 }
 0xa02   :  { %v670_v5 = vadd.f32 %v1745_v50, %v669_v51 }
 0xa04   :  { %1363 = vtanh.f32 %v670_v5  ;;  %v1273_v52 = vmul.f32 -1.442695, %v670_v5 }
 0xa05   :  { %1365 = vpow2.f32 %v1275_v7 }
 0xa0a   :  { %v1364_v6 = vpop.eup %1363 }
 0xa0b   :  { %694 = vrot.lane.b32.xlu2 %v1364_v6, %s1568_s3  ;;  %v1366_v8 = vpop.eup %1365 }
 0xa0c   :  { %v736_v34 = vadd.f32 1.0, %v1366_v8 }
 0xa0e   :  { %1367 = vrcp.f32 %v736_v34  ;;  %v748_v42 = vand.u32 2147483648, %v736_v34  ;;  %vm742_vm2 = vweird.f32 %v736_v34  ;;  %v746_v43 = vand.u32 2147483647, %v736_v34 }
 0xa0f   :  { %1369 = vpow2.f32 %v1273_v52 }
 0xa10   :  { %v749_v57 = vor.u32 1.1754944e-38, %v748_v42  ;;  %vm747_vm4 = vcmp.eq.f32.partialorder %v746_v43, 8.507059e+37 }
 0xa14   :  { %v1368_v53 = vpop.eup %1367 }
 0xa15   :  { %v1370_v38 = vpop.eup %1369  ;;  %v738_v54 = vmul.f32 %v1368_v53, %v736_v34  ;;  %vm743_vm1 = vweird.f32 %v1368_v53 }
 0xa16   :  { %v675_v55 = vadd.f32 1.0, %v1370_v38  ;;  %vm744_vm3 = vmor %vm742_vm2, %vm743_vm1 }
 0xa17   :  { %v739_v39 = vsub.f32 1.0, %v738_v54 }
 0xa18   :  { %1371 = vrcp.f32 %v675_v55  ;;  %v687_v0 = vand.u32 2147483648, %v675_v55  ;;  %vm681_vm8 = vweird.f32 %v675_v55  ;;  %v685_v1 = vand.u32 2147483647, %v675_v55 }
 0xa19   :  { %v740_v56 = vmul.f32 %v1368_v53, %v739_v39 }
 0xa1a   :  { %v688_v3 = vor.u32 1.1754944e-38, %v687_v0  ;;  %vm686_vm10 = vcmp.eq.f32.partialorder %v685_v1, 8.507059e+37 }
 0xa1b   :  { %v741_v41 = vadd.f32 %v1368_v53, %v740_v56 }
 0xa1d   :  { %v745_v47 = vsel %vm744_vm3, %v1368_v53, %v741_v41 }
 0xa1e   :  { %v1372_v40 = vpop.eup %1371  ;;  %v750_v59 = vsel %vm747_vm4, %v749_v57, %v745_v47 }
 0xa1f   :  { %v677_v44 = vmul.f32 %v1372_v40, %v675_v55  ;;  %vm682_vm7 = vweird.f32 %v1372_v40  ;;  %v753_v11 = vmul.f32 %v750_v59, %v1820_v24 }
 0xa20   :  { %vm683_vm9 = vmor %vm681_vm8, %vm682_vm7 }
 0xa21   :  { %v678_v60 = vsub.f32 1.0, %v677_v44 }
 0xa23   :  { %v679_v62 = vmul.f32 %v1372_v40, %v678_v60 }
 0xa25   :  { %v680_v63 = vadd.f32 %v1372_v40, %v679_v62 }
 0xa27   :  { %v684_v2 = vsel %vm683_vm9, %v1372_v40, %v680_v63 }
 0xa28   :  { %v689_v9 = vsel %vm686_vm10, %v688_v3, %v684_v2 }
 0xa29   :  { %v692_v15 = vmul.f32 %v689_v9, %v1824_v28 }
 0xa56   :  { %v756_v58 = vpop.permute.xlu1 %755 }
 0xa57   :  { %v758_v61 = vmul.f32 %v756_v58, %v750_v59 }
 0xa59   :  { %760 = vrot.lane.b32.xlu0 %v758_v61, %s1569_s13 }
 0xa65   :  { %v695_v4 = vpop.permute.xlu2 %694 }
 0xa66   :  { %v697_v10 = vmul.f32 %v695_v4, %v689_v9 }
 0xa68   :  { %699 = vrot.lane.b32.xlu1 %v697_v10, %s1569_s13 }
 0xacb   :  { %v761_v12 = vpop.permute.xlu0 %760 }
 0xacc   :  { %v1844_v13 = vadd.f32 %v761_v12, %v753_v11 }
 0xace   :  { %1373 = vtanh.f32 %v1844_v13 }
 0xad4   :  { %v1374_v14 = vpop.eup %1373 }
 0xad5   :  { %766 = vrot.lane.b32.xlu2 %v1374_v14, %s1568_s3 }
 0xada   :  { %v700_v16 = vpop.permute.xlu1 %699 }
 0xadb   :  { %v1849_v17 = vadd.f32 %v700_v16, %v692_v15 }
 0xadd   :  { %1375 = vtanh.f32 %v1849_v17 }
 0xae3   :  { %v1376_v18 = vpop.eup %1375 }
 0xae4   :  { %705 = vrot.lane.b32.xlu0 %v1376_v18, %s1568_s3 }
 0xb2f   :  { %v767_v19 = vpop.permute.xlu2 %766 }
 0xb30   :  { %v769_v20 = vmul.f32 %v767_v19, %v750_v59 }
 0xb32   :  { %771 = vrot.lane.b32.xlu1 %v769_v20, %s1569_s13 }
 0xb56   :  { %v706_v21 = vpop.permute.xlu0 %705 }
 0xb57   :  { %v708_v22 = vmul.f32 %v706_v21, %v689_v9 }
 0xb59   :  { %775 = vrot.lane.b32.xlu2 %v708_v22, %s1568_s3 }
 0xba4   :  { %v772_v23 = vpop.permute.xlu1 %771 }
 0xba5   :  { %1278 = vmatmul.msk.f32.vlgmr.msra.gmra.mxu3 %vm188_vm5, %v772_v23 }
 0xbb3   :  { %v776_v24 = vpop.permute.xlu2 %775 }
 0xbb4   :  { %v778_v25 = vsel %vm188_vm5, %v772_v23, %v776_v24 }
 0xbb5   :  { %1276 = vmatmul.msk.f32.vlgmr.msrb.gmra.mxu1 %vm258_vm6, %v778_v25 }
 0xc28   :  { %v859_v27 = vpop.f32.mrf.mxu3 }
 0xc29   :  { %v862_v28 = vadd.f32 %v859_v27, %v839_v26 }
 0xc2b   :  { %1377 = vtanh.f32 %v862_v28  ;;  %v1279_v37 = vmul.f32 -1.442695, %v862_v28 }
 0xc31   :  { %v1378_v29 = vpop.eup %1377 }
 0xc32   :  { %885 = vrot.lane.b32.xlu1 %v1378_v29, %s1568_s3  ;;  %v799_v31 = vpop.f32.mrf.mxu1 }
 0xc33   :  { %v800_v33 = vadd.f32 %v1745_v50, %v799_v31 }
 0xc35   :  { %1379 = vtanh.f32 %v800_v33  ;;  %v1277_v45 = vmul.f32 -1.442695, %v800_v33 }
 0xc36   :  { %1381 = vpow2.f32 %v1279_v37 }
 0xc37   :  { %1383 = vpow2.f32 %v1277_v45 }
 0xc3b   :  { %v1380_v35 = vpop.eup %1379 }
 0xc3c   :  { %824 = vrot.lane.b32.xlu0 %v1380_v35, %s1568_s3  ;;  %v1382_v32 = vpop.eup %1381 }
 0xc3d   :  { %v866_v46 = vadd.f32 1.0, %v1382_v32  ;;  %v1384_v48 = vpop.eup %1383 }
 0xc3e   :  { %v805_v36 = vadd.f32 1.0, %v1384_v48 }
 0xc3f   :  { %1385 = vrcp.f32 %v866_v46  ;;  %v878_v34 = vand.u32 2147483648, %v866_v46  ;;  %vm872_vm12 = vweird.f32 %v866_v46  ;;  %v876_v52 = vand.u32 2147483647, %v866_v46 }
 0xc40   :  { %1387 = vrcp.f32 %v805_v36  ;;  %v817_v42 = vand.u32 2147483648, %v805_v36  ;;  %vm811_vm0 = vweird.f32 %v805_v36  ;;  %v815_v43 = vand.u32 2147483647, %v805_v36 }
 0xc41   :  { %v879_v54 = vor.u32 1.1754944e-38, %v878_v34  ;;  %vm877_vm14 = vcmp.eq.f32.partialorder %v876_v52, 8.507059e+37 }
 0xc42   :  { %v818_v47 = vor.u32 1.1754944e-38, %v817_v42  ;;  %vm816_vm2 = vcmp.eq.f32.partialorder %v815_v43, 8.507059e+37 }
 0xc45   :  { %v1386_v30 = vpop.eup %1385 }
 0xc46   :  { %v868_v49 = vmul.f32 %v1386_v30, %v866_v46  ;;  %v1388_v5 = vpop.eup %1387  ;;  %vm873_vm11 = vweird.f32 %v1386_v30 }
 0xc47   :  { %v807_v7 = vmul.f32 %v1388_v5, %v805_v36  ;;  %vm874_vm13 = vmor %vm872_vm12, %vm873_vm11  ;;  %vm812_vm15 = vweird.f32 %v1388_v5 }
 0xc48   :  { %v869_v51 = vsub.f32 1.0, %v868_v49  ;;  %vm813_vm1 = vmor %vm811_vm0, %vm812_vm15 }
 0xc49   :  { %v808_v53 = vsub.f32 1.0, %v807_v7 }
 0xc4a   :  { %v870_v6 = vmul.f32 %v1386_v30, %v869_v51 }
 0xc4b   :  { %v809_v55 = vmul.f32 %v1388_v5, %v808_v53 }
 0xc4c   :  { %v871_v8 = vadd.f32 %v1386_v30, %v870_v6 }
 0xc4d   :  { %v810_v41 = vadd.f32 %v1388_v5, %v809_v55 }
 0xc4e   :  { %v875_v38 = vsel %vm874_vm13, %v1386_v30, %v871_v8 }
 0xc4f   :  { %v880_v56 = vsel %vm877_vm14, %v879_v54, %v875_v38  ;;  %v814_v44 = vsel %vm813_vm1, %v1388_v5, %v810_v41 }
 0xc50   :  { %v819_v58 = vsel %vm816_vm2, %v818_v47, %v814_v44  ;;  %v883_v0 = vmul.f32 %v880_v56, %v1844_v13 }
 0xc51   :  { %v822_v60 = vmul.f32 %v819_v58, %v1849_v17  ;;  %v969_v17 = vld [vmem:[#allocation2 + $0x30] sm:$0xff] }
 0xca4   :  { %v886_v39 = vpop.permute.xlu1 %885 }
 0xca5   :  { %v888_v40 = vmul.f32 %v886_v39, %v880_v56 }
 0xca7   :  { %890 = vrot.lane.b32.xlu0 %v888_v40, %s1569_s13 }
 0xcae   :  { %v825_v57 = vpop.permute.xlu0 %824 }
 0xcaf   :  { %v827_v59 = vmul.f32 %v825_v57, %v819_v58 }
 0xcb1   :  { %829 = vrot.lane.b32.xlu2 %v827_v59, %s1569_s13 }
 0xd0b   :  { %v830_v61 = vpop.permute.xlu2 %829 }
 0xd0c   :  { %v1864_v62 = vadd.f32 %v830_v61, %v822_v60 }
 0xd0e   :  { %1389 = vtanh.f32 %v1864_v62 }
 0xd14   :  { %v1390_v63 = vpop.eup %1389 }
 0xd15   :  { %835 = vrot.lane.b32.xlu1 %v1390_v63, %s1568_s3 }
 0xd19   :  { %v891_v1 = vpop.permute.xlu0 %890 }
 0xd1a   :  { %v1869_v2 = vadd.f32 %v891_v1, %v883_v0  ;;  %v1099_v0 = vld [vmem:[#allocation2 + $0x38] sm:$0xff] }
 0xd1c   :  { %1391 = vtanh.f32 %v1869_v2 }
 0xd22   :  { %v1392_v3 = vpop.eup %1391 }
 0xd23   :  { %896 = vrot.lane.b32.xlu2 %v1392_v3, %s1568_s3 }
 0xd7d   :  { %v897_v4 = vpop.permute.xlu2 %896 }
 0xd7e   :  { %v899_v9 = vmul.f32 %v897_v4, %v880_v56 }
 0xd80   :  { %901 = vrot.lane.b32.xlu0 %v899_v9, %s1569_s13 }
 0xd87   :  { %v836_v10 = vpop.permute.xlu1 %835 }
 0xd88   :  { %v838_v11 = vmul.f32 %v836_v10, %v819_v58 }
 0xd8a   :  { %905 = vrot.lane.b32.xlu1 %v838_v11, %s1568_s3 }
 0xdf2   :  { %v902_v12 = vpop.permute.xlu0 %901 }
 0xdfc   :  { %v906_v14 = vpop.permute.xlu1 %905 }
 0xdfd   :  { %v908_v13 = vsel %vm188_vm5, %v902_v12, %v906_v14 }
 0xdfe   :  { %1280 = vmatmul.msk.f32.vlgmr.msrb.gmra.mxu0 %vm258_vm6, %v908_v13 }
 0xe06   :  { %1282 = vmatmul.msk.f32.vlgmr.msra.gmra.mxu0 %vm188_vm5, %v902_v12 }
 0xe7b   :  { %v929_v15 = vpop.f32.mrf.mxu0 }
 0xe7c   :  { %v930_v16 = vadd.f32 %v1745_v50, %v929_v15 }
 0xe7e   :  { %1393 = vtanh.f32 %v930_v16  ;;  %v1281_v22 = vmul.f32 -1.442695, %v930_v16 }
 0xe83   :  { %v989_v18 = vpop.f32.mrf.mxu0 }
 0xe84   :  { %v1394_v19 = vpop.eup %1393  ;;  %v992_v20 = vadd.f32 %v989_v18, %v969_v17 }
 0xe85   :  { %954 = vrot.lane.b32.xlu2 %v1394_v19, %s1568_s3 }
 0xe86   :  { %1395 = vtanh.f32 %v992_v20  ;;  %v1283_v28 = vmul.f32 -1.442695, %v992_v20 }
 0xe87   :  { %1397 = vpow2.f32 %v1281_v22 }
 0xe8c   :  { %v1396_v21 = vpop.eup %1395 }
 0xe8d   :  { %1015 = vrot.lane.b32.xlu0 %v1396_v21, %s1568_s3  ;;  %v1398_v23 = vpop.eup %1397 }
 0xe8e   :  { %v935_v24 = vadd.f32 1.0, %v1398_v23 }
 0xe90   :  { %1399 = vrcp.f32 %v935_v24  ;;  %v947_v33 = vand.u32 2147483648, %v935_v24  ;;  %vm941_vm4 = vweird.f32 %v935_v24  ;;  %v945_v35 = vand.u32 2147483647, %v935_v24 }
 0xe91   :  { %1401 = vpow2.f32 %v1283_v28 }
 0xe92   :  { %v948_v45 = vor.u32 1.1754944e-38, %v947_v33  ;;  %vm946_vm8 = vcmp.eq.f32.partialorder %v945_v35, 8.507059e+37 }
 0xe96   :  { %v1400_v25 = vpop.eup %1399 }
 0xe97   :  { %v937_v26 = vmul.f32 %v1400_v25, %v935_v24  ;;  %vm942_vm3 = vweird.f32 %v1400_v25  ;;  %v1402_v37 = vpop.eup %1401 }
 0xe98   :  { %vm943_vm7 = vmor %vm941_vm4, %vm942_vm3  ;;  %v996_v46 = vadd.f32 1.0, %v1402_v37 }
 0xe99   :  { %v938_v27 = vsub.f32 1.0, %v937_v26 }
 0xe9a   :  { %1403 = vrcp.f32 %v996_v46  ;;  %v1008_v8 = vand.u32 2147483648, %v996_v46  ;;  %vm1002_vm10 = vweird.f32 %v996_v46  ;;  %v1006_v34 = vand.u32 2147483647, %v996_v46 }
 0xe9b   :  { %v939_v29 = vmul.f32 %v1400_v25, %v938_v27 }
 0xe9c   :  { %v1009_v53 = vor.u32 1.1754944e-38, %v1008_v8  ;;  %vm1007_vm12 = vcmp.eq.f32.partialorder %v1006_v34, 8.507059e+37 }
 0xe9d   :  { %v940_v31 = vadd.f32 %v1400_v25, %v939_v29 }
 0xe9f   :  { %v944_v32 = vsel %vm943_vm7, %v1400_v25, %v940_v31 }
 0xea0   :  { %v949_v30 = vsel %vm946_vm8, %v948_v45, %v944_v32  ;;  %v1404_v49 = vpop.eup %1403 }
 0xea1   :  { %v998_v51 = vmul.f32 %v1404_v49, %v996_v46  ;;  %vm1003_vm9 = vweird.f32 %v1404_v49  ;;  %v952_v39 = vmul.f32 %v949_v30, %v1864_v62 }
 0xea2   :  { %vm1004_vm11 = vmor %vm1002_vm10, %vm1003_vm9  ;;  %vm1248_vm10 = vcmask 1024  }
 0xea3   :  { %v999_v5 = vsub.f32 1.0, %v998_v51 }
 0xea5   :  { %v1000_v6 = vmul.f32 %v1404_v49, %v999_v5 }
 0xea7   :  { %v1001_v7 = vadd.f32 %v1404_v49, %v1000_v6 }
 0xea9   :  { %v1005_v52 = vsel %vm1004_vm11, %v1404_v49, %v1001_v7 }
 0xeaa   :  { %v1010_v54 = vsel %vm1007_vm12, %v1009_v53, %v1005_v52 }
 0xeab   :  { %v1013_v41 = vmul.f32 %v1010_v54, %v1869_v2 }
 0xedf   :  { %v955_v48 = vpop.permute.xlu2 %954 }
 0xee0   :  { %v957_v36 = vmul.f32 %v955_v48, %v949_v30 }
 0xee2   :  { %959 = vrot.lane.b32.xlu1 %v957_v36, %s1569_s13 }
 0xeff   :  { %v1016_v38 = vpop.permute.xlu0 %1015 }
 0xf00   :  { %v1018_v55 = vmul.f32 %v1016_v38, %v1010_v54 }
 0xf02   :  { %1020 = vrot.lane.b32.xlu2 %v1018_v55, %s1569_s13 }
 0xf54   :  { %v960_v56 = vpop.permute.xlu1 %959 }
 0xf55   :  { %v1884_v40 = vadd.f32 %v960_v56, %v952_v39 }
 0xf57   :  { %1405 = vtanh.f32 %v1884_v40 }
 0xf5c   :  { %v1021_v42 = vpop.permute.xlu2 %1020 }
 0xf5d   :  { %v1406_v43 = vpop.eup %1405  ;;  %v1888_v44 = vadd.f32 %v1021_v42, %v1013_v41  ;;  %v1433_v42 = vld [vmem:[%s1931_s6] ss:$0 sm:$0xff] }
 0xf5e   :  { %965 = vrot.lane.b32.xlu0 %v1406_v43, %s1568_s3 }
 0xf5f   :  { %1407 = vtanh.f32 %v1888_v44 }
 0xf65   :  { %v1408_v47 = vpop.eup %1407 }
 0xf66   :  { %1026 = vrot.lane.b32.xlu1 %v1408_v47, %s1568_s3 }
 0xfd0   :  { %v966_v57 = vpop.permute.xlu0 %965 }
 0xfd1   :  { %v968_v58 = vmul.f32 %v966_v57, %v949_v30 }
 0xfd3   :  { %1035 = vrot.lane.b32.xlu0 %v968_v58, %s1568_s3 }
 0xfd8   :  { %v1027_v59 = vpop.permute.xlu1 %1026 }
 0xfd9   :  { %v1029_v60 = vmul.f32 %v1027_v59, %v1010_v54  ;;  %v1303_v59 = vld [vmem:[%s1932_s7] ss:$0 sm:$0xff] }
 0xfdb   :  { %1031 = vrot.lane.b32.xlu2 %v1029_v60, %s1569_s13 }
0x1035   :  { %v1032_v61 = vpop.permute.xlu2 %1031 }
0x1036   :  { %1286 = vmatmul.msk.f32.vlgmr.msra.gmra.mxu1 %vm188_vm5, %v1032_v61 }
0x1045   :  { %v1036_v62 = vpop.permute.xlu0 %1035 }
0x1046   :  { %v1038_v63 = vsel %vm188_vm5, %v1032_v61, %v1036_v62 }
0x1047   :  { %1284 = vmatmul.msk.f32.vlgmr.msrb.gmra.mxu3 %vm258_vm6, %v1038_v63 }
0x10b3   :  { %v1119_v1 = vpop.f32.mrf.mxu1 }
0x10b4   :  { %v1122_v2 = vadd.f32 %v1119_v1, %v1099_v0 }
0x10b6   :  { %1409 = vtanh.f32 %v1122_v2  ;;  %v1287_v11 = vmul.f32 -1.442695, %v1122_v2 }
0x10bc   :  { %v1410_v3 = vpop.eup %1409 }
0x10bd   :  { %1145 = vrot.lane.b32.xlu2 %v1410_v3, %s1568_s3 }
0x10ca   :  { %v1059_v4 = vpop.f32.mrf.mxu3 }
0x10cb   :  { %v1060_v9 = vadd.f32 %v1745_v50, %v1059_v4 }
0x10cd   :  { %1411 = vtanh.f32 %v1060_v9  ;;  %v1285_v25 = vmul.f32 -1.442695, %v1060_v9 }
0x10ce   :  { %1413 = vpow2.f32 %v1287_v11 }
0x10d3   :  { %v1412_v10 = vpop.eup %1411 }
0x10d4   :  { %1084 = vrot.lane.b32.xlu1 %v1412_v10, %s1568_s3  ;;  %v1414_v12 = vpop.eup %1413 }
0x10d5   :  { %v1126_v14 = vadd.f32 1.0, %v1414_v12 }
0x10d7   :  { %1415 = vrcp.f32 %v1126_v14  ;;  %v1138_v19 = vand.u32 2147483648, %v1126_v14  ;;  %vm1132_vm14 = vweird.f32 %v1126_v14  ;;  %v1136_v20 = vand.u32 2147483647, %v1126_v14 }
0x10d8   :  { %1417 = vpow2.f32 %v1285_v25 }
0x10d9   :  { %v1139_v21 = vor.u32 1.1754944e-38, %v1138_v19  ;;  %vm1137_vm0 = vcmp.eq.f32.partialorder %v1136_v20, 8.507059e+37 }
0x10dd   :  { %v1416_v13 = vpop.eup %1415 }
0x10de   :  { %v1128_v15 = vmul.f32 %v1416_v13, %v1126_v14  ;;  %vm1133_vm13 = vweird.f32 %v1416_v13  ;;  %v1418_v26 = vpop.eup %1417 }
0x10df   :  { %vm1134_vm15 = vmor %vm1132_vm14, %vm1133_vm13  ;;  %v1065_v27 = vadd.f32 1.0, %v1418_v26 }
0x10e0   :  { %v1129_v16 = vsub.f32 1.0, %v1128_v15 }
0x10e1   :  { %1419 = vrcp.f32 %v1065_v27  ;;  %v1077_v37 = vand.u32 2147483648, %v1065_v27  ;;  %vm1071_vm2 = vweird.f32 %v1065_v27  ;;  %v1075_v32 = vand.u32 2147483647, %v1065_v27 }
0x10e2   :  { %v1130_v17 = vmul.f32 %v1416_v13, %v1129_v16 }
0x10e3   :  { %v1078_v46 = vor.u32 1.1754944e-38, %v1077_v37  ;;  %vm1076_vm4 = vcmp.eq.f32.partialorder %v1075_v32, 8.507059e+37 }
0x10e4   :  { %v1131_v18 = vadd.f32 %v1416_v13, %v1130_v17 }
0x10e6   :  { %v1135_v50 = vsel %vm1134_vm15, %v1416_v13, %v1131_v18 }
0x10e7   :  { %v1140_v23 = vsel %vm1137_vm0, %v1139_v21, %v1135_v50  ;;  %v1420_v28 = vpop.eup %1419  ;;  %v1304_v21 = vld [vmem:[#allocation3] ss:$0 sm:$0xff] }
0x10e8   :  { %v1067_v29 = vmul.f32 %v1420_v28, %v1065_v27  ;;  %vm1072_vm1 = vweird.f32 %v1420_v28  ;;  %v1143_v49 = vmul.f32 %v1140_v23, %v1888_v44 }
0x10e9   :  { %vm1073_vm3 = vmor %vm1071_vm2, %vm1072_vm1 }
0x10ea   :  { %v1068_v31 = vsub.f32 1.0, %v1067_v29 }
0x10ec   :  { %v1069_v33 = vmul.f32 %v1420_v28, %v1068_v31 }
0x10ee   :  { %v1070_v35 = vadd.f32 %v1420_v28, %v1069_v33 }
0x10f0   :  { %v1074_v45 = vsel %vm1073_vm3, %v1420_v28, %v1070_v35 }
0x10f1   :  { %v1079_v30 = vsel %vm1076_vm4, %v1078_v46, %v1074_v45 }
0x10f2   :  { %v1082_v7 = vmul.f32 %v1079_v30, %v1884_v40 }
0x1117   :  { %v1146_v22 = vpop.permute.xlu2 %1145 }
0x1118   :  { %v1148_v24 = vmul.f32 %v1146_v22, %v1140_v23 }
0x111a   :  { %1150 = vrot.lane.b32.xlu1 %v1148_v24, %s1569_s13 }
0x1146   :  { %v1085_v48 = vpop.permute.xlu1 %1084 }
0x1147   :  { %v1087_v36 = vmul.f32 %v1085_v48, %v1079_v30 }
0x1149   :  { %1089 = vrot.lane.b32.xlu0 %v1087_v36, %s1569_s13 }
0x118c   :  { %v1151_v51 = vpop.permute.xlu1 %1150 }
0x118d   :  { %v1153_v5 = vadd.f32 %v1151_v51, %v1143_v49 }
0x118f   :  { %1421 = vtanh.f32 %v1153_v5 }
0x1195   :  { %v1422_v6 = vpop.eup %1421 }
0x1196   :  { %1156 = vrot.lane.b32.xlu0 %v1422_v6, %s1568_s3 }
0x11bb   :  { %v1090_v8 = vpop.permute.xlu0 %1089 }
0x11bc   :  { %v1092_v34 = vadd.f32 %v1090_v8, %v1082_v7 }
0x11be   :  { %1423 = vtanh.f32 %v1092_v34 }
0x11c4   :  { %v1424_v52 = vpop.eup %1423 }
0x11c5   :  { %1095 = vrot.lane.b32.xlu2 %v1424_v52, %s1568_s3 }
0x1208   :  { %v1157_v53 = vpop.permute.xlu0 %1156 }
0x1209   :  { %v1159_v38 = vmul.f32 %v1157_v53, %v1140_v23 }
0x120b   :  { %1161 = vrot.lane.b32.xlu1 %v1159_v38, %s1569_s13 }
0x121f   :  { %v1096_v54 = vpop.permute.xlu2 %1095 }
0x1220   :  { %v1098_v55 = vmul.f32 %v1096_v54, %v1079_v30 }
0x1222   :  { %1165 = vrot.lane.b32.xlu2 %v1098_v55, %s1568_s3 }
0x127c   :  { %v1166_v39 = vpop.permute.xlu2 %1165 }
0x127d   :  { %v1162_v56 = vpop.permute.xlu1 %1161 }
0x127e   :  { %v1168_v41 = vsel %vm188_vm5, %v1162_v56, %v1166_v39 }
0x127f   :  { %1288 = vmatmul.msk.f32.vlgmr.msra.gmra.mxu2 %vm258_vm6, %v1168_v41 }
0x1302   :  { %v1189_v40 = vpop.f32.mrf.mxu2 }
0x1303   :  { %v1190_v43 = vadd.f32 %v1433_v42, %v1189_v40 }
0x1305   :  { %1425 = vtanh.f32 %v1190_v43  ;;  %v1289_v47 = vmul.f32 -1.442695, %v1190_v43 }
0x1307   :  { %1427 = vpow2.f32 %v1289_v47 }
0x130b   :  { %v1426_v44 = vpop.eup %1425 }
0x130c   :  { %1214 = vrot.lane.b32.xlu0 %v1426_v44, %s1568_s3 }
0x130d   :  { %v1428_v57 = vpop.eup %1427 }
0x130e   :  { %v1195_v58 = vadd.f32 1.0, %v1428_v57 }
0x1310   :  { %1429 = vrcp.f32 %v1195_v58  ;;  %v1207_v1 = vand.u32 2147483648, %v1195_v58  ;;  %vm1201_vm7 = vweird.f32 %v1195_v58  ;;  %v1205_v2 = vand.u32 2147483647, %v1195_v58 }
0x1312   :  { %v1208_v4 = vor.u32 1.1754944e-38, %v1207_v1  ;;  %vm1206_vm9 = vcmp.eq.f32.partialorder %v1205_v2, 8.507059e+37 }
0x1314   :  { %1232 = vrot.lane.b32.xlu0 %v1303_v59, %s1570_s20 }
0x1316   :  { %v1430_v60 = vpop.eup %1429 }
0x1317   :  { %v1197_v61 = vmul.f32 %v1430_v60, %v1195_v58  ;;  %vm1202_vm6 = vweird.f32 %v1430_v60 }
0x1318   :  { %vm1203_vm8 = vmor %vm1201_vm7, %vm1202_vm6 }
0x1319   :  { %v1198_v62 = vsub.f32 1.0, %v1197_v61 }
0x131b   :  { %v1199_v63 = vmul.f32 %v1430_v60, %v1198_v62 }
0x131d   :  { %v1200_v0 = vadd.f32 %v1430_v60, %v1199_v63 }
0x131f   :  { %v1204_v3 = vsel %vm1203_vm8, %v1430_v60, %v1200_v0 }
0x1320   :  { %v1209_v10 = vsel %vm1206_vm9, %v1208_v4, %v1204_v3 }
0x1321   :  { %v1212_v12 = vmul.f32 %v1209_v10, %v1092_v34 }
0x137e   :  { %v1215_v9 = vpop.permute.xlu0 %1214 }
0x137f   :  { %v1217_v11 = vmul.f32 %v1215_v9, %v1209_v10 }
0x1381   :  { %1219 = vrot.lane.b32.xlu1 %v1217_v11, %s1569_s13 }
0x1386   :  { %v1233_v17 = vpop.permute.xlu0 %1232 }
0x13f3   :  { %v1220_v14 = vpop.permute.xlu1 %1219 }
0x13f4   :  { %v1222_v13 = vadd.f32 %v1220_v14, %v1212_v12 }
0x13f6   :  { %1431 = vtanh.f32 %v1222_v13 }
0x13fc   :  { %v1432_v15 = vpop.eup %1431 }
0x13fd   :  { %1225 = vrot.lane.b32.xlu2 %v1432_v15, %s1568_s3 }
0x1457   :  { %v1226_v16 = vpop.permute.xlu2 %1225 }
0x1458   :  { %v1228_v18 = vmul.f32 %v1226_v16, %v1209_v10 }
0x145a   :  { %v1235_v19 = vmul.f32 %v1233_v17, %v1228_v18 }
0x145c   :  { %1237 = vrot.lane.b32.xlu1 %v1235_v19, %s1569_s13 }
0x14ce   :  { %v1238_v20 = vpop.permute.xlu1 %1237 }
0x14cf   :  { %v1240_v50 = vsel %vm188_vm5, %v1238_v20, 0.0 }
0x14d0   :  { %1241 = vadd.xlane.f32.xlu2 %v1240_v50 }
0x1543   :  { %v1242_v22 = vpop.xlane.xlu2 %1241 }
0x1544   :  { %v1247_v23 = vadd.f32 %v1304_v21, %v1242_v22 }
0x1546   :  { %1249 = vst.msk [vmem:[%s1934_s9] sm:$0x3] %vm1248_vm10, %v1247_v23 }
0x1547   :  { %1254 = vsyncpa [#allocation5], 1 }
0x1548   :  { %1255 = vsyncpa [#allocation7], 1 }
0x1549   :  { %1256 = vsyncpa [#allocation10], 1 }

</bundles_post_ra>
